<compile_context>
chip_gen: v5e
topology: v5e:2x2
jax: 0.10.0
libtpu: 0.0.40
codegen_flags: <defaults>
</compile_context>

<pallas_src>
import functools

import jax
import jax.numpy as jnp
import numpy as np
from jax import lax
from jax.experimental import pallas as pl
from jax.experimental.pallas import tpu as pltpu

EPS = 1e-5


# ----------------------------- wrapper-side prep -----------------------------

def _pad_and_split(x, stride):
    """NCHW f32 -> (N, P, C, Hq*Wq) parity planes of the 1-px zero-padded input."""
    N, C, H, W = x.shape
    xp = jnp.pad(x, ((0, 0), (0, 0), (1, 1), (1, 1)))
    Hp, Wp = H + 2, W + 2
    if stride == 1:
        return xp.reshape(N, 1, C, Hp * Wp), Hp, Wp
    Hq, Wq = (Hp + 1) // 2, (Wp + 1) // 2
    xp = jnp.pad(xp, ((0, 0), (0, 0), (0, 2 * Hq - Hp), (0, 2 * Wq - Wp)))
    xq = xp.reshape(N, C, Hq, 2, Wq, 2).transpose(0, 3, 5, 1, 2, 4)
    return xq.reshape(N, 4, C, Hq * Wq), Hq, Wq


def _interior_masks(H, W, stride, Hq, Wq):
    """(P, 1, Hq*Wq) f32: 1 where a parity-plane element maps to a real pixel."""
    P = stride * stride
    m = np.zeros((P, 1, Hq * Wq), np.float32)
    u = np.arange(Hq)[:, None]
    v = np.arange(Wq)[None, :]
    for py in range(stride):
        for px in range(stride):
            oy = stride * u + py - 1
            ox = stride * v + px - 1
            ok = (oy >= 0) & (oy < H) & (ox >= 0) & (ox < W)
            m[py * stride + px, 0] = ok.reshape(-1)
    return jnp.asarray(m)


def _valid_col_mask(Ho, Wo, pitch):
    """(1, L) f32 mask of valid columns in the 'extended' conv-output layout."""
    L = (Ho - 1) * pitch + Wo
    return jnp.asarray(((np.arange(L) % pitch) < Wo).reshape(1, L).astype(np.float32))


def _pack_w(w):
    """(O, I, kh, kw) -> (O, kh*kw*I) bf16, rows matching the im2col row order."""
    O, I, kh, kw = w.shape
    return jnp.transpose(w, (0, 2, 3, 1)).reshape(O, kh * kw * I).astype(jnp.bfloat16)


# ------------------------------- fused Block ---------------------------------

def block_forward(x_nchw, params, *, stride, use_1x1, shallow):
    assert stride in (1, 2)
    N, Cin, H, W = x_nchw.shape
    x = x_nchw.astype(jnp.float32)

    w1 = params["conv1_w"]
    C1 = w1.shape[0]
    deep = not shallow
    if deep:
        w2 = params["conv2_w"]
        Cout, k2 = w2.shape[0], w2.shape[2]
    else:
        Cout, k2 = C1, None
    if stride == 1:
        assert Cin == Cout, "identity x_path requires in_chan == out_chan"

    Ho = (H + 2 - 3) // stride + 1
    Wo = (W + 2 - 3) // stride + 1
    Mo = Ho * Wo

    parts, Hq, Wq = _pad_and_split(x, stride)          # (N, P, Cin, Lp) f32
    P = stride * stride
    Lp = Hq * Wq
    Wrow = Wq                                          # row pitch, conv1 ext. output
    Lout1 = (Ho - 1) * Wrow + Wo

    deep3 = deep and k2 == 3
    if deep3:
        Wpp = Wo + 2
        Lpad2 = (Ho + 2) * Wpp
        Lout2 = (Ho - 1) * Wpp + Wo
        pitch_main = Wpp
    else:
        pitch_main = Wrow

    # conv1 tap -> (parity plane, flat lane offset); every window is contiguous.
    tap1 = [((dy % stride) * stride + (dx % stride),
             (dy // stride) * Wrow + (dx // stride))
            for dy in range(3) for dx in range(3)]

    inv_hw = 1.0 / float(H * W)
    inv_mo = 1.0 / float(Mo)

    def kernel(*refs):
        it = iter(refs)
        parts_ref = next(it)        # (P, Cin, Lp)        f32
        m1_ref = next(it)           # (P, 1, Lp)          f32
        g1_ref = next(it)           # (Cin, 1)            f32
        b1_ref = next(it)           # (Cin, 1)            f32
        w1_ref = next(it)           # (C1, 9*Cin)         bf16
        if deep:
            m2_ref = next(it)       # (1, Lout1)          f32
            g2_ref = next(it)       # (C1, 1)             f32
            b2_ref = next(it)       # (C1, 1)             f32
            w2_ref = next(it)       # (Cout, k2*k2*C1)    bf16
        if stride == 2:
            wx_ref = next(it)       # (Cout, Cin)         bf16
        o_ref = next(it)            # (Cout, Mo)          f32
        im1_ref = next(it)          # (9*Cin, Lout1)      bf16 scratch
        if deep3:
            padbuf_ref = next(it)   # (C1, Lpad2)         bf16 scratch
            im2_ref = next(it)      # (9*C1, Lout2)       bf16 scratch

        xs = [parts_ref[p] for p in range(P)]           # (Cin, Lp) f32

        # --- GroupNorm(num_groups=Cin) + ReLU: two-pass f32 stats -------------
        ssum = jnp.zeros((Cin, 1), jnp.float32)
        for p in range(P):                              # pad entries are exact 0
            ssum = ssum + jnp.sum(xs[p], axis=1, keepdims=True)
        mean1 = ssum * inv_hw
        svar = jnp.zeros((Cin, 1), jnp.float32)
        for p in range(P):
            d = (xs[p] - mean1) * m1_ref[p]
            svar = svar + jnp.sum(d * d, axis=1, keepdims=True)
        scale1 = g1_ref[...] * lax.rsqrt(svar * inv_hw + EPS)
        shift1 = b1_ref[...] - mean1 * scale1
        # normalize + relu + re-zero pad ring; cast to bf16 exactly once.
        ys = [(jnp.maximum(xs[p] * scale1 + shift1, 0.0) * m1_ref[p])
              .astype(jnp.bfloat16) for p in range(P)]

        # --- conv1: in-VMEM im2col + ONE packed MXU matmul (no RMW) -----------
        for t, (p, off) in enumerate(tap1):
            im1_ref[t * Cin:(t + 1) * Cin, :] = ys[p][:, off:off + Lout1]
        y1 = jnp.dot(w1_ref[...], im1_ref[...],
                     preferred_element_type=jnp.float32)          # (C1, Lout1)

        # --- residual path -----------------------------------------------------
        if stride == 2:
            # parity (1,1) plane == x[:, ::2, ::2]; columns align with y1's.
            xres = xs[3][:, :Lout1].astype(jnp.bfloat16)
            resid = jnp.dot(wx_ref[...], xres,
                            preferred_element_type=jnp.float32)   # (Cout, Lout1)
        else:
            resid = xs[0][:, Wq + 1:Wq + 1 + Lout1]               # identity (f32)

        # --- main path tail ----------------------------------------------------
        if shallow:
            main = y1
        else:
            m2 = m2_ref[...]
            mean2 = jnp.sum(y1 * m2, axis=1, keepdims=True) * inv_mo
            d2 = (y1 - mean2) * m2
            var2 = jnp.sum(d2 * d2, axis=1, keepdims=True) * inv_mo
            scale2 = g2_ref[...] * lax.rsqrt(var2 + EPS)
            shift2 = b2_ref[...] - mean2 * scale2
            y2 = jnp.maximum(y1 * scale2 + shift2, 0.0)           # (C1, Lout1)
            if k2 == 1:
                main = jnp.dot(w2_ref[...], y2.astype(jnp.bfloat16),
                               preferred_element_type=jnp.float32)
            else:
                # repack valid rows into a zero-padded scratch (pitch Wo+2).
                padbuf_ref[...] = jnp.zeros_like(padbuf_ref)
                y2b = y2.astype(jnp.bfloat16)
                for i in range(Ho):
                    dst = (i + 1) * Wpp + 1
                    padbuf_ref[:, dst:dst + Wo] = y2b[:, i * Wrow:i * Wrow + Wo]
                for dy in range(3):
                    for dx in range(3):
                        t = dy * 3 + dx
                        off = dy * Wpp + dx
                        im2_ref[t * C1:(t + 1) * C1, :] = padbuf_ref[:, off:off + Lout2]
                main = jnp.dot(w2_ref[...], im2_ref[...],
                               preferred_element_type=jnp.float32)  # (Cout, Lout2)

        # --- epilogue: fused residual add + dense (Cout, Ho*Wo) store ---------
        for i in range(Ho):
            o_ref[:, i * Wo:(i + 1) * Wo] = (
                main[:, i * pitch_main:i * pitch_main + Wo]
                + resid[:, i * Wrow:i * Wrow + Wo])

    # ---- inputs & specs --------------------------------------------------------
    inputs = [parts,
              _interior_masks(H, W, stride, Hq, Wq),
              params["gn1_w"].reshape(Cin, 1).astype(jnp.float32),
              params["gn1_b"].reshape(Cin, 1).astype(jnp.float32),
              _pack_w(w1)]
    in_specs = [pl.BlockSpec((None, P, Cin, Lp), lambda n: (n, 0, 0, 0)),
                pl.BlockSpec((P, 1, Lp), lambda n: (0, 0, 0)),
                pl.BlockSpec((Cin, 1), lambda n: (0, 0)),
                pl.BlockSpec((Cin, 1), lambda n: (0, 0)),
                pl.BlockSpec((C1, 9 * Cin), lambda n: (0, 0))]
    if deep:
        inputs += [_valid_col_mask(Ho, Wo, Wrow),
                   params["gn2_w"].reshape(C1, 1).astype(jnp.float32),
                   params["gn2_b"].reshape(C1, 1).astype(jnp.float32),
                   _pack_w(w2)]
        in_specs += [pl.BlockSpec((1, Lout1), lambda n: (0, 0)),
                     pl.BlockSpec((C1, 1), lambda n: (0, 0)),
                     pl.BlockSpec((C1, 1), lambda n: (0, 0)),
                     pl.BlockSpec((Cout, k2 * k2 * C1), lambda n: (0, 0))]
    if stride == 2:
        inputs += [_pack_w(params["xpath_w"])]
        in_specs += [pl.BlockSpec((Cout, Cin), lambda n: (0, 0))]

    scratch_shapes = [pltpu.VMEM((9 * Cin, Lout1), jnp.bfloat16)]
    if deep3:
        scratch_shapes += [pltpu.VMEM((C1, Lpad2), jnp.bfloat16),
                           pltpu.VMEM((9 * C1, Lout2), jnp.bfloat16)]

    out = pl.pallas_call(
        kernel,
        out_shape=jax.ShapeDtypeStruct((N, Cout, Mo), jnp.float32),
        grid=(N,),
        in_specs=in_specs,
        out_specs=pl.BlockSpec((None, Cout, Mo), lambda n: (n, 0, 0)),
        scratch_shapes=scratch_shapes,
        compiler_params=pltpu.CompilerParams(
            dimension_semantics=("parallel",),     # v7x: 2 TCs split the batch
            vmem_limit_bytes=32 * 1024 * 1024),
    )(*inputs)

    return out.reshape(N, Cout, Ho, Wo)            # NCHW, free reshape


def init_params(key, in_chan, out_chan, stride, use_1x1, shallow):
    ks = jax.random.split(key, 8)
    p = {
        "gn1_w": 1.0 + 0.1 * jax.random.normal(ks[0], (in_chan,), jnp.float32),
        "gn1_b": 0.05 * jax.random.normal(ks[1], (in_chan,), jnp.float32),
    }
    if use_1x1:
        mid = 4 * in_chan
        p["conv1_w"] = 0.1 * jax.random.normal(ks[2], (mid, in_chan, 3, 3), jnp.float32)
        p["conv2_w"] = 0.1 * jax.random.normal(ks[3], (out_chan, mid, 1, 1), jnp.float32)
        p["gn2_w"] = 1.0 + 0.1 * jax.random.normal(ks[4], (mid,), jnp.float32)
        p["gn2_b"] = 0.05 * jax.random.normal(ks[5], (mid,), jnp.float32)
    else:
        p["conv1_w"] = 0.1 * jax.random.normal(ks[2], (out_chan, in_chan, 3, 3), jnp.float32)
        if not shallow:
            p["conv2_w"] = 0.1 * jax.random.normal(ks[3], (out_chan, out_chan, 3, 3), jnp.float32)
            p["gn2_w"] = 1.0 + 0.1 * jax.random.normal(ks[4], (out_chan,), jnp.float32)
            p["gn2_b"] = 0.05 * jax.random.normal(ks[5], (out_chan,), jnp.float32)
    if stride == 2:
        p["xpath_w"] = 0.1 * jax.random.normal(ks[6], (out_chan, in_chan, 1, 1), jnp.float32)
    return p


# ------------------------- pure-JAX reference (check) -------------------------

def _ref_gn_relu(x_nchw, g, b):
    N, C, H, W = x_nchw.shape
    xr = x_nchw.reshape(N, C, H * W)
    mean = xr.mean(-1, keepdims=True)
    var = ((xr - mean) ** 2).mean(-1, keepdims=True)
    y = (xr - mean) / jnp.sqrt(var + EPS)
    y = y * g[None, :, None] + b[None, :, None]
    return jnp.maximum(y, 0.0).reshape(N, C, H, W)


def _ref_conv(x, w, stride, pad):
    return lax.conv_general_dilated(
        x, w, (stride, stride), [(pad, pad), (pad, pad)],
        dimension_numbers=("NCHW", "OIHW", "NCHW"),
        precision=jax.lax.Precision.HIGHEST)


def ref_block(x, params, *, stride, use_1x1, shallow):
    y = _ref_gn_relu(x, params["gn1_w"], params["gn1_b"])
    y = _ref_conv(y, params["conv1_w"], stride, 1)
    if not shallow:
        y = _ref_gn_relu(y, params["gn2_w"], params["gn2_b"])
        if use_1x1:
            y = _ref_conv(y, params["conv2_w"], 1, 0)
        else:
            y = _ref_conv(y, params["conv2_w"], 1, 1)
    xp = x if stride == 1 else _ref_conv(x, params["xpath_w"], stride, 0)
    return xp + y


# ------------------------------------ main ------------------------------------

if __name__ == "__main__":
    key = jax.random.PRNGKey(0)
    kx, kp1, kp2, kp3 = jax.random.split(key, 4)
    x = jax.random.normal(kx, (2, 4, 16, 16), jnp.float32)

    configs = [
        # (in, out, stride, use_1x1, shallow, key, expected output shape)
        (4, 8, 2, False, False, kp1, (2, 8, 8, 8)),     # deep, downsample path
        (4, 4, 1, True, False, kp2, (2, 4, 16, 16)),    # bottleneck, identity x_path
        (4, 8, 2, False, True, kp3, (2, 8, 8, 8)),      # shallow, conv1 + x_path only
    ]

    for in_c, out_c, stride, use_1x1, shallow, kp, out_shape in configs:
        params = init_params(kp, in_c, out_c, stride, use_1x1, shallow)
        fwd = jax.jit(functools.partial(
            block_forward, stride=stride, use_1x1=use_1x1, shallow=shallow))
        z = jax.block_until_ready(fwd(x, params))
        assert z.shape == out_shape, (z.shape, out_shape)
        z_ref = ref_block(x, params, stride=stride, use_1x1=use_1x1, shallow=shallow)
        # bf16 MXU operands (f32 accumulation / f32 GN stats) -> loose tolerance.
        np.testing.assert_allclose(np.asarray(z), np.asarray(z_ref),
                                   rtol=2e-2, atol=2e-2)

    print("KERNEL_OK")
</pallas_src>

<mosaic_0001>
module attributes {stable_mosaic.version = 11 : i64} {
  func.func @kernel(%arg0: i32, %arg1: memref<1x4x4x81xf32, #tpu.memory_space<vmem>>, %arg2: memref<4x1x81xf32, #tpu.memory_space<vmem>>, %arg3: memref<4x1xf32, #tpu.memory_space<vmem>>, %arg4: memref<4x1xf32, #tpu.memory_space<vmem>>, %arg5: memref<8x36xbf16, #tpu.memory_space<vmem>>, %arg6: memref<1x71xf32, #tpu.memory_space<vmem>>, %arg7: memref<8x1xf32, #tpu.memory_space<vmem>>, %arg8: memref<8x1xf32, #tpu.memory_space<vmem>>, %arg9: memref<8x72xbf16, #tpu.memory_space<vmem>>, %arg10: memref<8x4xbf16, #tpu.memory_space<vmem>>, %arg11: memref<1x8x64xf32, #tpu.memory_space<vmem>>, %arg12: memref<36x71xbf16, #tpu.memory_space<vmem>>, %arg13: memref<8x100xbf16, #tpu.memory_space<vmem>>, %arg14: memref<72x78xbf16, #tpu.memory_space<vmem>>) attributes {dimension_semantics = [#tpu.dimension_semantics<parallel>], iteration_bounds = array<i64: 2>, scalar_prefetch = 0 : i64, scratch_operands = 3 : i64, tpu.core_type = #tpu.core_type<tc>, window_params = [{transform_indices = @transform_0, window_bounds = array<i64: 1, 4, 4, 81>}, {pipeline_mode = #tpu.pipeline_mode<synchronous>, transform_indices = @transform_1, window_bounds = array<i64: 4, 1, 81>}, {pipeline_mode = #tpu.pipeline_mode<synchronous>, transform_indices = @transform_2, window_bounds = array<i64: 4, 1>}, {pipeline_mode = #tpu.pipeline_mode<synchronous>, transform_indices = @transform_3, window_bounds = array<i64: 4, 1>}, {pipeline_mode = #tpu.pipeline_mode<synchronous>, transform_indices = @transform_4, window_bounds = array<i64: 8, 36>}, {pipeline_mode = #tpu.pipeline_mode<synchronous>, transform_indices = @transform_5, window_bounds = array<i64: 1, 71>}, {pipeline_mode = #tpu.pipeline_mode<synchronous>, transform_indices = @transform_6, window_bounds = array<i64: 8, 1>}, {pipeline_mode = #tpu.pipeline_mode<synchronous>, transform_indices = @transform_7, window_bounds = array<i64: 8, 1>}, {pipeline_mode = #tpu.pipeline_mode<synchronous>, transform_indices = @transform_8, window_bounds = array<i64: 8, 72>}, {pipeline_mode = #tpu.pipeline_mode<synchronous>, transform_indices = @transform_9, window_bounds = array<i64: 8, 4>}, {transform_indices = @transform_10, window_bounds = array<i64: 1, 8, 64>}]} {
    %c0 = arith.constant 0 : index
    %c0_0 = arith.constant 0 : index
    %c0_1 = arith.constant 0 : index
    %c0_2 = arith.constant 0 : index
    %0 = vector.load %arg1[%c0, %c0_0, %c0_1, %c0_2] : memref<1x4x4x81xf32, #tpu.memory_space<vmem>>, vector<1x1x4x81xf32>
    %1 = vector.shape_cast %0 : vector<1x1x4x81xf32> to vector<4x81xf32>
    %c0_3 = arith.constant 0 : index
    %c1 = arith.constant 1 : index
    %c0_4 = arith.constant 0 : index
    %c0_5 = arith.constant 0 : index
    %2 = vector.load %arg1[%c0_3, %c1, %c0_4, %c0_5] : memref<1x4x4x81xf32, #tpu.memory_space<vmem>>, vector<1x1x4x81xf32>
    %3 = vector.shape_cast %2 : vector<1x1x4x81xf32> to vector<4x81xf32>
    %c0_6 = arith.constant 0 : index
    %c2 = arith.constant 2 : index
    %c0_7 = arith.constant 0 : index
    %c0_8 = arith.constant 0 : index
    %4 = vector.load %arg1[%c0_6, %c2, %c0_7, %c0_8] : memref<1x4x4x81xf32, #tpu.memory_space<vmem>>, vector<1x1x4x81xf32>
    %5 = vector.shape_cast %4 : vector<1x1x4x81xf32> to vector<4x81xf32>
    %c0_9 = arith.constant 0 : index
    %c3 = arith.constant 3 : index
    %c0_10 = arith.constant 0 : index
    %c0_11 = arith.constant 0 : index
    %6 = vector.load %arg1[%c0_9, %c3, %c0_10, %c0_11] : memref<1x4x4x81xf32, #tpu.memory_space<vmem>>, vector<1x1x4x81xf32>
    %7 = vector.shape_cast %6 : vector<1x1x4x81xf32> to vector<4x81xf32>
    %cst = arith.constant 0.000000e+00 : f32
    %8 = vector.broadcast %cst : f32 to vector<4x1xf32>
    %cst_12 = arith.constant dense<0.000000e+00> : vector<4xf32>
    %9 = vector.multi_reduction <add>, %1, %cst_12 [1] : vector<4x81xf32> to vector<4xf32>
    %10 = vector.shape_cast %9 : vector<4xf32> to vector<4x1xf32>
    %11 = arith.addf %8, %10 : vector<4x1xf32>
    %cst_13 = arith.constant dense<0.000000e+00> : vector<4xf32>
    %12 = vector.multi_reduction <add>, %3, %cst_13 [1] : vector<4x81xf32> to vector<4xf32>
    %13 = vector.shape_cast %12 : vector<4xf32> to vector<4x1xf32>
    %14 = arith.addf %11, %13 : vector<4x1xf32>
    %cst_14 = arith.constant dense<0.000000e+00> : vector<4xf32>
    %15 = vector.multi_reduction <add>, %5, %cst_14 [1] : vector<4x81xf32> to vector<4xf32>
    %16 = vector.shape_cast %15 : vector<4xf32> to vector<4x1xf32>
    %17 = arith.addf %14, %16 : vector<4x1xf32>
    %cst_15 = arith.constant dense<0.000000e+00> : vector<4xf32>
    %18 = vector.multi_reduction <add>, %7, %cst_15 [1] : vector<4x81xf32> to vector<4xf32>
    %19 = vector.shape_cast %18 : vector<4xf32> to vector<4x1xf32>
    %20 = arith.addf %17, %19 : vector<4x1xf32>
    %cst_16 = arith.constant 3.906250e-03 : f32
    %21 = vector.broadcast %cst_16 : f32 to vector<4x1xf32>
    %22 = arith.mulf %20, %21 : vector<4x1xf32>
    %cst_17 = arith.constant 0.000000e+00 : f32
    %23 = vector.broadcast %cst_17 : f32 to vector<4x1xf32>
    %24 = vector.broadcast %22 : vector<4x1xf32> to vector<4x81xf32>
    %25 = arith.subf %1, %24 : vector<4x81xf32>
    %c0_18 = arith.constant 0 : index
    %c0_19 = arith.constant 0 : index
    %c0_20 = arith.constant 0 : index
    %26 = vector.load %arg2[%c0_18, %c0_19, %c0_20] : memref<4x1x81xf32, #tpu.memory_space<vmem>>, vector<1x1x81xf32>
    %27 = vector.shape_cast %26 : vector<1x1x81xf32> to vector<1x81xf32>
    %28 = vector.broadcast %27 : vector<1x81xf32> to vector<4x81xf32>
    %29 = arith.mulf %25, %28 : vector<4x81xf32>
    %30 = arith.mulf %29, %29 : vector<4x81xf32>
    %cst_21 = arith.constant dense<0.000000e+00> : vector<4xf32>
    %31 = vector.multi_reduction <add>, %30, %cst_21 [1] : vector<4x81xf32> to vector<4xf32>
    %32 = vector.shape_cast %31 : vector<4xf32> to vector<4x1xf32>
    %33 = arith.addf %23, %32 : vector<4x1xf32>
    %34 = vector.broadcast %22 : vector<4x1xf32> to vector<4x81xf32>
    %35 = arith.subf %3, %34 : vector<4x81xf32>
    %c1_22 = arith.constant 1 : index
    %c0_23 = arith.constant 0 : index
    %c0_24 = arith.constant 0 : index
    %36 = vector.load %arg2[%c1_22, %c0_23, %c0_24] : memref<4x1x81xf32, #tpu.memory_space<vmem>>, vector<1x1x81xf32>
    %37 = vector.shape_cast %36 : vector<1x1x81xf32> to vector<1x81xf32>
    %38 = vector.broadcast %37 : vector<1x81xf32> to vector<4x81xf32>
    %39 = arith.mulf %35, %38 : vector<4x81xf32>
    %40 = arith.mulf %39, %39 : vector<4x81xf32>
    %cst_25 = arith.constant dense<0.000000e+00> : vector<4xf32>
    %41 = vector.multi_reduction <add>, %40, %cst_25 [1] : vector<4x81xf32> to vector<4xf32>
    %42 = vector.shape_cast %41 : vector<4xf32> to vector<4x1xf32>
    %43 = arith.addf %33, %42 : vector<4x1xf32>
    %44 = vector.broadcast %22 : vector<4x1xf32> to vector<4x81xf32>
    %45 = arith.subf %5, %44 : vector<4x81xf32>
    %c2_26 = arith.constant 2 : index
    %c0_27 = arith.constant 0 : index
    %c0_28 = arith.constant 0 : index
    %46 = vector.load %arg2[%c2_26, %c0_27, %c0_28] : memref<4x1x81xf32, #tpu.memory_space<vmem>>, vector<1x1x81xf32>
    %47 = vector.shape_cast %46 : vector<1x1x81xf32> to vector<1x81xf32>
    %48 = vector.broadcast %47 : vector<1x81xf32> to vector<4x81xf32>
    %49 = arith.mulf %45, %48 : vector<4x81xf32>
    %50 = arith.mulf %49, %49 : vector<4x81xf32>
    %cst_29 = arith.constant dense<0.000000e+00> : vector<4xf32>
    %51 = vector.multi_reduction <add>, %50, %cst_29 [1] : vector<4x81xf32> to vector<4xf32>
    %52 = vector.shape_cast %51 : vector<4xf32> to vector<4x1xf32>
    %53 = arith.addf %43, %52 : vector<4x1xf32>
    %54 = vector.broadcast %22 : vector<4x1xf32> to vector<4x81xf32>
    %55 = arith.subf %7, %54 : vector<4x81xf32>
    %c3_30 = arith.constant 3 : index
    %c0_31 = arith.constant 0 : index
    %c0_32 = arith.constant 0 : index
    %56 = vector.load %arg2[%c3_30, %c0_31, %c0_32] : memref<4x1x81xf32, #tpu.memory_space<vmem>>, vector<1x1x81xf32>
    %57 = vector.shape_cast %56 : vector<1x1x81xf32> to vector<1x81xf32>
    %58 = vector.broadcast %57 : vector<1x81xf32> to vector<4x81xf32>
    %59 = arith.mulf %55, %58 : vector<4x81xf32>
    %60 = arith.mulf %59, %59 : vector<4x81xf32>
    %cst_33 = arith.constant dense<0.000000e+00> : vector<4xf32>
    %61 = vector.multi_reduction <add>, %60, %cst_33 [1] : vector<4x81xf32> to vector<4xf32>
    %62 = vector.shape_cast %61 : vector<4xf32> to vector<4x1xf32>
    %63 = arith.addf %53, %62 : vector<4x1xf32>
    %c0_34 = arith.constant 0 : index
    %c0_35 = arith.constant 0 : index
    %64 = vector.load %arg3[%c0_34, %c0_35] : memref<4x1xf32, #tpu.memory_space<vmem>>, vector<4x1xf32>
    %cst_36 = arith.constant 3.906250e-03 : f32
    %65 = vector.broadcast %cst_36 : f32 to vector<4x1xf32>
    %66 = arith.mulf %63, %65 : vector<4x1xf32>
    %cst_37 = arith.constant 9.99999974E-6 : f32
    %67 = vector.broadcast %cst_37 : f32 to vector<4x1xf32>
    %68 = arith.addf %66, %67 : vector<4x1xf32>
    %69 = math.rsqrt %68 : vector<4x1xf32>
    %70 = arith.mulf %64, %69 : vector<4x1xf32>
    %c0_38 = arith.constant 0 : index
    %c0_39 = arith.constant 0 : index
    %71 = vector.load %arg4[%c0_38, %c0_39] : memref<4x1xf32, #tpu.memory_space<vmem>>, vector<4x1xf32>
    %72 = arith.mulf %22, %70 : vector<4x1xf32>
    %73 = arith.subf %71, %72 : vector<4x1xf32>
    %74 = vector.broadcast %70 : vector<4x1xf32> to vector<4x81xf32>
    %75 = arith.mulf %1, %74 : vector<4x81xf32>
    %76 = vector.broadcast %73 : vector<4x1xf32> to vector<4x81xf32>
    %77 = arith.addf %75, %76 : vector<4x81xf32>
    %cst_40 = arith.constant 0.000000e+00 : f32
    %78 = vector.broadcast %cst_40 : f32 to vector<4x81xf32>
    %79 = arith.maximumf %77, %78 : vector<4x81xf32>
    %c0_41 = arith.constant 0 : index
    %c0_42 = arith.constant 0 : index
    %c0_43 = arith.constant 0 : index
    %80 = vector.load %arg2[%c0_41, %c0_42, %c0_43] : memref<4x1x81xf32, #tpu.memory_space<vmem>>, vector<1x1x81xf32>
    %81 = vector.shape_cast %80 : vector<1x1x81xf32> to vector<1x81xf32>
    %82 = vector.broadcast %81 : vector<1x81xf32> to vector<4x81xf32>
    %83 = arith.mulf %79, %82 : vector<4x81xf32>
    %84 = arith.truncf %83 : vector<4x81xf32> to vector<4x81xbf16>
    %85 = vector.broadcast %70 : vector<4x1xf32> to vector<4x81xf32>
    %86 = arith.mulf %3, %85 : vector<4x81xf32>
    %87 = vector.broadcast %73 : vector<4x1xf32> to vector<4x81xf32>
    %88 = arith.addf %86, %87 : vector<4x81xf32>
    %cst_44 = arith.constant 0.000000e+00 : f32
    %89 = vector.broadcast %cst_44 : f32 to vector<4x81xf32>
    %90 = arith.maximumf %88, %89 : vector<4x81xf32>
    %c1_45 = arith.constant 1 : index
    %c0_46 = arith.constant 0 : index
    %c0_47 = arith.constant 0 : index
    %91 = vector.load %arg2[%c1_45, %c0_46, %c0_47] : memref<4x1x81xf32, #tpu.memory_space<vmem>>, vector<1x1x81xf32>
    %92 = vector.shape_cast %91 : vector<1x1x81xf32> to vector<1x81xf32>
    %93 = vector.broadcast %92 : vector<1x81xf32> to vector<4x81xf32>
    %94 = arith.mulf %90, %93 : vector<4x81xf32>
    %95 = arith.truncf %94 : vector<4x81xf32> to vector<4x81xbf16>
    %96 = vector.broadcast %70 : vector<4x1xf32> to vector<4x81xf32>
    %97 = arith.mulf %5, %96 : vector<4x81xf32>
    %98 = vector.broadcast %73 : vector<4x1xf32> to vector<4x81xf32>
    %99 = arith.addf %97, %98 : vector<4x81xf32>
    %cst_48 = arith.constant 0.000000e+00 : f32
    %100 = vector.broadcast %cst_48 : f32 to vector<4x81xf32>
    %101 = arith.maximumf %99, %100 : vector<4x81xf32>
    %c2_49 = arith.constant 2 : index
    %c0_50 = arith.constant 0 : index
    %c0_51 = arith.constant 0 : index
    %102 = vector.load %arg2[%c2_49, %c0_50, %c0_51] : memref<4x1x81xf32, #tpu.memory_space<vmem>>, vector<1x1x81xf32>
    %103 = vector.shape_cast %102 : vector<1x1x81xf32> to vector<1x81xf32>
    %104 = vector.broadcast %103 : vector<1x81xf32> to vector<4x81xf32>
    %105 = arith.mulf %101, %104 : vector<4x81xf32>
    %106 = arith.truncf %105 : vector<4x81xf32> to vector<4x81xbf16>
    %107 = vector.broadcast %70 : vector<4x1xf32> to vector<4x81xf32>
    %108 = arith.mulf %7, %107 : vector<4x81xf32>
    %109 = vector.broadcast %73 : vector<4x1xf32> to vector<4x81xf32>
    %110 = arith.addf %108, %109 : vector<4x81xf32>
    %cst_52 = arith.constant 0.000000e+00 : f32
    %111 = vector.broadcast %cst_52 : f32 to vector<4x81xf32>
    %112 = arith.maximumf %110, %111 : vector<4x81xf32>
    %c3_53 = arith.constant 3 : index
    %c0_54 = arith.constant 0 : index
    %c0_55 = arith.constant 0 : index
    %113 = vector.load %arg2[%c3_53, %c0_54, %c0_55] : memref<4x1x81xf32, #tpu.memory_space<vmem>>, vector<1x1x81xf32>
    %114 = vector.shape_cast %113 : vector<1x1x81xf32> to vector<1x81xf32>
    %115 = vector.broadcast %114 : vector<1x81xf32> to vector<4x81xf32>
    %116 = arith.mulf %112, %115 : vector<4x81xf32>
    %117 = arith.truncf %116 : vector<4x81xf32> to vector<4x81xbf16>
    %118 = vector.extract_strided_slice %84 {offsets = [0, 0], sizes = [4, 71], strides = [1, 1]} : vector<4x81xbf16> to vector<4x71xbf16>
    %c0_56 = arith.constant 0 : index
    %c0_57 = arith.constant 0 : index
    %119 = vector.load %arg12[%c0_56, %c0_57] : memref<36x71xbf16, #tpu.memory_space<vmem>>, vector<4x71xbf16>
    tpu.vector_store %arg12[%c0_56, %c0_57], %118 {strides = array<i32>} : memref<36x71xbf16, #tpu.memory_space<vmem>>, vector<4x71xbf16>,
    %120 = vector.extract_strided_slice %95 {offsets = [0, 0], sizes = [4, 71], strides = [1, 1]} : vector<4x81xbf16> to vector<4x71xbf16>
    %c4 = arith.constant 4 : index
    %c0_58 = arith.constant 0 : index
    %121 = vector.load %arg12[%c4, %c0_58] : memref<36x71xbf16, #tpu.memory_space<vmem>>, vector<4x71xbf16>
    tpu.vector_store %arg12[%c4, %c0_58], %120 {strides = array<i32>} : memref<36x71xbf16, #tpu.memory_space<vmem>>, vector<4x71xbf16>,
    %122 = vector.extract_strided_slice %84 {offsets = [0, 1], sizes = [4, 71], strides = [1, 1]} : vector<4x81xbf16> to vector<4x71xbf16>
    %c8 = arith.constant 8 : index
    %c0_59 = arith.constant 0 : index
    %123 = vector.load %arg12[%c8, %c0_59] : memref<36x71xbf16, #tpu.memory_space<vmem>>, vector<4x71xbf16>
    tpu.vector_store %arg12[%c8, %c0_59], %122 {strides = array<i32>} : memref<36x71xbf16, #tpu.memory_space<vmem>>, vector<4x71xbf16>,
    %124 = vector.extract_strided_slice %106 {offsets = [0, 0], sizes = [4, 71], strides = [1, 1]} : vector<4x81xbf16> to vector<4x71xbf16>
    %c12 = arith.constant 12 : index
    %c0_60 = arith.constant 0 : index
    %125 = vector.load %arg12[%c12, %c0_60] : memref<36x71xbf16, #tpu.memory_space<vmem>>, vector<4x71xbf16>
    tpu.vector_store %arg12[%c12, %c0_60], %124 {strides = array<i32>} : memref<36x71xbf16, #tpu.memory_space<vmem>>, vector<4x71xbf16>,
    %126 = vector.extract_strided_slice %117 {offsets = [0, 0], sizes = [4, 71], strides = [1, 1]} : vector<4x81xbf16> to vector<4x71xbf16>
    %c16 = arith.constant 16 : index
    %c0_61 = arith.constant 0 : index
    %127 = vector.load %arg12[%c16, %c0_61] : memref<36x71xbf16, #tpu.memory_space<vmem>>, vector<4x71xbf16>
    tpu.vector_store %arg12[%c16, %c0_61], %126 {strides = array<i32>} : memref<36x71xbf16, #tpu.memory_space<vmem>>, vector<4x71xbf16>,
    %128 = vector.extract_strided_slice %106 {offsets = [0, 1], sizes = [4, 71], strides = [1, 1]} : vector<4x81xbf16> to vector<4x71xbf16>
    %c20 = arith.constant 20 : index
    %c0_62 = arith.constant 0 : index
    %129 = vector.load %arg12[%c20, %c0_62] : memref<36x71xbf16, #tpu.memory_space<vmem>>, vector<4x71xbf16>
    tpu.vector_store %arg12[%c20, %c0_62], %128 {strides = array<i32>} : memref<36x71xbf16, #tpu.memory_space<vmem>>, vector<4x71xbf16>,
    %130 = vector.extract_strided_slice %84 {offsets = [0, 9], sizes = [4, 71], strides = [1, 1]} : vector<4x81xbf16> to vector<4x71xbf16>
    %c24 = arith.constant 24 : index
    %c0_63 = arith.constant 0 : index
    %131 = vector.load %arg12[%c24, %c0_63] : memref<36x71xbf16, #tpu.memory_space<vmem>>, vector<4x71xbf16>
    tpu.vector_store %arg12[%c24, %c0_63], %130 {strides = array<i32>} : memref<36x71xbf16, #tpu.memory_space<vmem>>, vector<4x71xbf16>,
    %132 = vector.extract_strided_slice %95 {offsets = [0, 9], sizes = [4, 71], strides = [1, 1]} : vector<4x81xbf16> to vector<4x71xbf16>
    %c28 = arith.constant 28 : index
    %c0_64 = arith.constant 0 : index
    %133 = vector.load %arg12[%c28, %c0_64] : memref<36x71xbf16, #tpu.memory_space<vmem>>, vector<4x71xbf16>
    tpu.vector_store %arg12[%c28, %c0_64], %132 {strides = array<i32>} : memref<36x71xbf16, #tpu.memory_space<vmem>>, vector<4x71xbf16>,
    %134 = vector.extract_strided_slice %84 {offsets = [0, 10], sizes = [4, 71], strides = [1, 1]} : vector<4x81xbf16> to vector<4x71xbf16>
    %c32 = arith.constant 32 : index
    %c0_65 = arith.constant 0 : index
    %135 = vector.load %arg12[%c32, %c0_65] : memref<36x71xbf16, #tpu.memory_space<vmem>>, vector<4x71xbf16>
    tpu.vector_store %arg12[%c32, %c0_65], %134 {strides = array<i32>} : memref<36x71xbf16, #tpu.memory_space<vmem>>, vector<4x71xbf16>,
    %c0_66 = arith.constant 0 : index
    %c0_67 = arith.constant 0 : index
    %136 = vector.load %arg5[%c0_66, %c0_67] : memref<8x36xbf16, #tpu.memory_space<vmem>>, vector<8x36xbf16>
    %c0_68 = arith.constant 0 : index
    %c0_69 = arith.constant 0 : index
    %137 = vector.load %arg12[%c0_68, %c0_69] : memref<36x71xbf16, #tpu.memory_space<vmem>>, vector<36x71xbf16>
    %cst_70 = arith.constant dense<0.000000e+00> : vector<8x71xf32>
    %138 = tpu.matmul %136, %137, %cst_70 {dimension_numbers = #tpu.dot_dimension_numbers<[1], [0], [0], [1], [0, 0, 1, 1], [], []>} : vector<8x36xbf16>, vector<36x71xbf16>, vector<8x71xf32> -> vector<8x71xf32>
    %139 = vector.extract_strided_slice %7 {offsets = [0, 0], sizes = [4, 71], strides = [1, 1]} : vector<4x81xf32> to vector<4x71xf32>
    %140 = arith.truncf %139 : vector<4x71xf32> to vector<4x71xbf16>
    %c0_71 = arith.constant 0 : index
    %c0_72 = arith.constant 0 : index
    %141 = vector.load %arg10[%c0_71, %c0_72] : memref<8x4xbf16, #tpu.memory_space<vmem>>, vector<8x4xbf16>
    %cst_73 = arith.constant dense<0.000000e+00> : vector<8x71xf32>
    %142 = tpu.matmul %141, %140, %cst_73 {dimension_numbers = #tpu.dot_dimension_numbers<[1], [0], [0], [1], [0, 0, 1, 1], [], []>} : vector<8x4xbf16>, vector<4x71xbf16>, vector<8x71xf32> -> vector<8x71xf32>
    %c0_74 = arith.constant 0 : index
    %c0_75 = arith.constant 0 : index
    %143 = vector.load %arg6[%c0_74, %c0_75] : memref<1x71xf32, #tpu.memory_space<vmem>>, vector<1x71xf32>
    %144 = vector.broadcast %143 : vector<1x71xf32> to vector<8x71xf32>
    %145 = arith.mulf %138, %144 : vector<8x71xf32>
    %cst_76 = arith.constant dense<0.000000e+00> : vector<8xf32>
    %146 = vector.multi_reduction <add>, %145, %cst_76 [1] : vector<8x71xf32> to vector<8xf32>
    %147 = vector.shape_cast %146 : vector<8xf32> to vector<8x1xf32>
    %cst_77 = arith.constant 1.562500e-02 : f32
    %148 = vector.broadcast %cst_77 : f32 to vector<8x1xf32>
    %149 = arith.mulf %147, %148 : vector<8x1xf32>
    %150 = vector.broadcast %149 : vector<8x1xf32> to vector<8x71xf32>
    %151 = arith.subf %138, %150 : vector<8x71xf32>
    %152 = vector.broadcast %143 : vector<1x71xf32> to vector<8x71xf32>
    %153 = arith.mulf %151, %152 : vector<8x71xf32>
    %154 = arith.mulf %153, %153 : vector<8x71xf32>
    %cst_78 = arith.constant dense<0.000000e+00> : vector<8xf32>
    %155 = vector.multi_reduction <add>, %154, %cst_78 [1] : vector<8x71xf32> to vector<8xf32>
    %156 = vector.shape_cast %155 : vector<8xf32> to vector<8x1xf32>
    %cst_79 = arith.constant 1.562500e-02 : f32
    %157 = vector.broadcast %cst_79 : f32 to vector<8x1xf32>
    %158 = arith.mulf %156, %157 : vector<8x1xf32>
    %c0_80 = arith.constant 0 : index
    %c0_81 = arith.constant 0 : index
    %159 = vector.load %arg7[%c0_80, %c0_81] : memref<8x1xf32, #tpu.memory_space<vmem>>, vector<8x1xf32>
    %cst_82 = arith.constant 9.99999974E-6 : f32
    %160 = vector.broadcast %cst_82 : f32 to vector<8x1xf32>
    %161 = arith.addf %158, %160 : vector<8x1xf32>
    %162 = math.rsqrt %161 : vector<8x1xf32>
    %163 = arith.mulf %159, %162 : vector<8x1xf32>
    %c0_83 = arith.constant 0 : index
    %c0_84 = arith.constant 0 : index
    %164 = vector.load %arg8[%c0_83, %c0_84] : memref<8x1xf32, #tpu.memory_space<vmem>>, vector<8x1xf32>
    %165 = arith.mulf %149, %163 : vector<8x1xf32>
    %166 = arith.subf %164, %165 : vector<8x1xf32>
    %167 = vector.broadcast %163 : vector<8x1xf32> to vector<8x71xf32>
    %168 = arith.mulf %138, %167 : vector<8x71xf32>
    %169 = vector.broadcast %166 : vector<8x1xf32> to vector<8x71xf32>
    %170 = arith.addf %168, %169 : vector<8x71xf32>
    %cst_85 = arith.constant 0.000000e+00 : f32
    %171 = vector.broadcast %cst_85 : f32 to vector<8x71xf32>
    %172 = arith.maximumf %170, %171 : vector<8x71xf32>
    %cst_86 = arith.constant 0.000000e+00 : bf16
    %173 = vector.broadcast %cst_86 : bf16 to vector<8x100xbf16>
    %c0_87 = arith.constant 0 : index
    %c0_88 = arith.constant 0 : index
    %174 = vector.load %arg13[%c0_87, %c0_88] : memref<8x100xbf16, #tpu.memory_space<vmem>>, vector<8x100xbf16>
    tpu.vector_store %arg13[%c0_87, %c0_88], %173 {strides = array<i32>} : memref<8x100xbf16, #tpu.memory_space<vmem>>, vector<8x100xbf16>,
    %175 = arith.truncf %172 : vector<8x71xf32> to vector<8x71xbf16>
    %176 = vector.extract_strided_slice %175 {offsets = [0, 0], sizes = [8, 8], strides = [1, 1]} : vector<8x71xbf16> to vector<8x8xbf16>
    %c0_89 = arith.constant 0 : index
    %c11 = arith.constant 11 : index
    %177 = vector.load %arg13[%c0_89, %c11] : memref<8x100xbf16, #tpu.memory_space<vmem>>, vector<8x8xbf16>
    tpu.vector_store %arg13[%c0_89, %c11], %176 {strides = array<i32>} : memref<8x100xbf16, #tpu.memory_space<vmem>>, vector<8x8xbf16>,
    %178 = vector.extract_strided_slice %175 {offsets = [0, 9], sizes = [8, 8], strides = [1, 1]} : vector<8x71xbf16> to vector<8x8xbf16>
    %c0_90 = arith.constant 0 : index
    %c21 = arith.constant 21 : index
    %179 = vector.load %arg13[%c0_90, %c21] : memref<8x100xbf16, #tpu.memory_space<vmem>>, vector<8x8xbf16>
    tpu.vector_store %arg13[%c0_90, %c21], %178 {strides = array<i32>} : memref<8x100xbf16, #tpu.memory_space<vmem>>, vector<8x8xbf16>,
    %180 = vector.extract_strided_slice %175 {offsets = [0, 18], sizes = [8, 8], strides = [1, 1]} : vector<8x71xbf16> to vector<8x8xbf16>
    %c0_91 = arith.constant 0 : index
    %c31 = arith.constant 31 : index
    %181 = vector.load %arg13[%c0_91, %c31] : memref<8x100xbf16, #tpu.memory_space<vmem>>, vector<8x8xbf16>
    tpu.vector_store %arg13[%c0_91, %c31], %180 {strides = array<i32>} : memref<8x100xbf16, #tpu.memory_space<vmem>>, vector<8x8xbf16>,
    %182 = vector.extract_strided_slice %175 {offsets = [0, 27], sizes = [8, 8], strides = [1, 1]} : vector<8x71xbf16> to vector<8x8xbf16>
    %c0_92 = arith.constant 0 : index
    %c41 = arith.constant 41 : index
    %183 = vector.load %arg13[%c0_92, %c41] : memref<8x100xbf16, #tpu.memory_space<vmem>>, vector<8x8xbf16>
    tpu.vector_store %arg13[%c0_92, %c41], %182 {strides = array<i32>} : memref<8x100xbf16, #tpu.memory_space<vmem>>, vector<8x8xbf16>,
    %184 = vector.extract_strided_slice %175 {offsets = [0, 36], sizes = [8, 8], strides = [1, 1]} : vector<8x71xbf16> to vector<8x8xbf16>
    %c0_93 = arith.constant 0 : index
    %c51 = arith.constant 51 : index
    %185 = vector.load %arg13[%c0_93, %c51] : memref<8x100xbf16, #tpu.memory_space<vmem>>, vector<8x8xbf16>
    tpu.vector_store %arg13[%c0_93, %c51], %184 {strides = array<i32>} : memref<8x100xbf16, #tpu.memory_space<vmem>>, vector<8x8xbf16>,
    %186 = vector.extract_strided_slice %175 {offsets = [0, 45], sizes = [8, 8], strides = [1, 1]} : vector<8x71xbf16> to vector<8x8xbf16>
    %c0_94 = arith.constant 0 : index
    %c61 = arith.constant 61 : index
    %187 = vector.load %arg13[%c0_94, %c61] : memref<8x100xbf16, #tpu.memory_space<vmem>>, vector<8x8xbf16>
    tpu.vector_store %arg13[%c0_94, %c61], %186 {strides = array<i32>} : memref<8x100xbf16, #tpu.memory_space<vmem>>, vector<8x8xbf16>,
    %188 = vector.extract_strided_slice %175 {offsets = [0, 54], sizes = [8, 8], strides = [1, 1]} : vector<8x71xbf16> to vector<8x8xbf16>
    %c0_95 = arith.constant 0 : index
    %c71 = arith.constant 71 : index
    %189 = vector.load %arg13[%c0_95, %c71] : memref<8x100xbf16, #tpu.memory_space<vmem>>, vector<8x8xbf16>
    tpu.vector_store %arg13[%c0_95, %c71], %188 {strides = array<i32>} : memref<8x100xbf16, #tpu.memory_space<vmem>>, vector<8x8xbf16>,
    %190 = vector.extract_strided_slice %175 {offsets = [0, 63], sizes = [8, 8], strides = [1, 1]} : vector<8x71xbf16> to vector<8x8xbf16>
    %c0_96 = arith.constant 0 : index
    %c81 = arith.constant 81 : index
    %191 = vector.load %arg13[%c0_96, %c81] : memref<8x100xbf16, #tpu.memory_space<vmem>>, vector<8x8xbf16>
    tpu.vector_store %arg13[%c0_96, %c81], %190 {strides = array<i32>} : memref<8x100xbf16, #tpu.memory_space<vmem>>, vector<8x8xbf16>,
    %c0_97 = arith.constant 0 : index
    %c0_98 = arith.constant 0 : index
    %192 = vector.load %arg13[%c0_97, %c0_98] : memref<8x100xbf16, #tpu.memory_space<vmem>>, vector<8x78xbf16>
    %c0_99 = arith.constant 0 : index
    %c0_100 = arith.constant 0 : index
    %193 = vector.load %arg14[%c0_99, %c0_100] : memref<72x78xbf16, #tpu.memory_space<vmem>>, vector<8x78xbf16>
    tpu.vector_store %arg14[%c0_99, %c0_100], %192 {strides = array<i32>} : memref<72x78xbf16, #tpu.memory_space<vmem>>, vector<8x78xbf16>,
    %c0_101 = arith.constant 0 : index
    %c1_102 = arith.constant 1 : index
    %194 = vector.load %arg13[%c0_101, %c1_102] : memref<8x100xbf16, #tpu.memory_space<vmem>>, vector<8x78xbf16>
    %c8_103 = arith.constant 8 : index
    %c0_104 = arith.constant 0 : index
    %195 = vector.load %arg14[%c8_103, %c0_104] : memref<72x78xbf16, #tpu.memory_space<vmem>>, vector<8x78xbf16>
    tpu.vector_store %arg14[%c8_103, %c0_104], %194 {strides = array<i32>} : memref<72x78xbf16, #tpu.memory_space<vmem>>, vector<8x78xbf16>,
    %c0_105 = arith.constant 0 : index
    %c2_106 = arith.constant 2 : index
    %196 = vector.load %arg13[%c0_105, %c2_106] : memref<8x100xbf16, #tpu.memory_space<vmem>>, vector<8x78xbf16>
    %c16_107 = arith.constant 16 : index
    %c0_108 = arith.constant 0 : index
    %197 = vector.load %arg14[%c16_107, %c0_108] : memref<72x78xbf16, #tpu.memory_space<vmem>>, vector<8x78xbf16>
    tpu.vector_store %arg14[%c16_107, %c0_108], %196 {strides = array<i32>} : memref<72x78xbf16, #tpu.memory_space<vmem>>, vector<8x78xbf16>,
    %c0_109 = arith.constant 0 : index
    %c10 = arith.constant 10 : index
    %198 = vector.load %arg13[%c0_109, %c10] : memref<8x100xbf16, #tpu.memory_space<vmem>>, vector<8x78xbf16>
    %c24_110 = arith.constant 24 : index
    %c0_111 = arith.constant 0 : index
    %199 = vector.load %arg14[%c24_110, %c0_111] : memref<72x78xbf16, #tpu.memory_space<vmem>>, vector<8x78xbf16>
    tpu.vector_store %arg14[%c24_110, %c0_111], %198 {strides = array<i32>} : memref<72x78xbf16, #tpu.memory_space<vmem>>, vector<8x78xbf16>,
    %c0_112 = arith.constant 0 : index
    %c11_113 = arith.constant 11 : index
    %200 = vector.load %arg13[%c0_112, %c11_113] : memref<8x100xbf16, #tpu.memory_space<vmem>>, vector<8x78xbf16>
    %c32_114 = arith.constant 32 : index
    %c0_115 = arith.constant 0 : index
    %201 = vector.load %arg14[%c32_114, %c0_115] : memref<72x78xbf16, #tpu.memory_space<vmem>>, vector<8x78xbf16>
    tpu.vector_store %arg14[%c32_114, %c0_115], %200 {strides = array<i32>} : memref<72x78xbf16, #tpu.memory_space<vmem>>, vector<8x78xbf16>,
    %c0_116 = arith.constant 0 : index
    %c12_117 = arith.constant 12 : index
    %202 = vector.load %arg13[%c0_116, %c12_117] : memref<8x100xbf16, #tpu.memory_space<vmem>>, vector<8x78xbf16>
    %c40 = arith.constant 40 : index
    %c0_118 = arith.constant 0 : index
    %203 = vector.load %arg14[%c40, %c0_118] : memref<72x78xbf16, #tpu.memory_space<vmem>>, vector<8x78xbf16>
    tpu.vector_store %arg14[%c40, %c0_118], %202 {strides = array<i32>} : memref<72x78xbf16, #tpu.memory_space<vmem>>, vector<8x78xbf16>,
    %c0_119 = arith.constant 0 : index
    %c20_120 = arith.constant 20 : index
    %204 = vector.load %arg13[%c0_119, %c20_120] : memref<8x100xbf16, #tpu.memory_space<vmem>>, vector<8x78xbf16>
    %c48 = arith.constant 48 : index
    %c0_121 = arith.constant 0 : index
    %205 = vector.load %arg14[%c48, %c0_121] : memref<72x78xbf16, #tpu.memory_space<vmem>>, vector<8x78xbf16>
    tpu.vector_store %arg14[%c48, %c0_121], %204 {strides = array<i32>} : memref<72x78xbf16, #tpu.memory_space<vmem>>, vector<8x78xbf16>,
    %c0_122 = arith.constant 0 : index
    %c21_123 = arith.constant 21 : index
    %206 = vector.load %arg13[%c0_122, %c21_123] : memref<8x100xbf16, #tpu.memory_space<vmem>>, vector<8x78xbf16>
    %c56 = arith.constant 56 : index
    %c0_124 = arith.constant 0 : index
    %207 = vector.load %arg14[%c56, %c0_124] : memref<72x78xbf16, #tpu.memory_space<vmem>>, vector<8x78xbf16>
    tpu.vector_store %arg14[%c56, %c0_124], %206 {strides = array<i32>} : memref<72x78xbf16, #tpu.memory_space<vmem>>, vector<8x78xbf16>,
    %c0_125 = arith.constant 0 : index
    %c22 = arith.constant 22 : index
    %208 = vector.load %arg13[%c0_125, %c22] : memref<8x100xbf16, #tpu.memory_space<vmem>>, vector<8x78xbf16>
    %c64 = arith.constant 64 : index
    %c0_126 = arith.constant 0 : index
    %209 = vector.load %arg14[%c64, %c0_126] : memref<72x78xbf16, #tpu.memory_space<vmem>>, vector<8x78xbf16>
    tpu.vector_store %arg14[%c64, %c0_126], %208 {strides = array<i32>} : memref<72x78xbf16, #tpu.memory_space<vmem>>, vector<8x78xbf16>,
    %c0_127 = arith.constant 0 : index
    %c0_128 = arith.constant 0 : index
    %210 = vector.load %arg9[%c0_127, %c0_128] : memref<8x72xbf16, #tpu.memory_space<vmem>>, vector<8x72xbf16>
    %c0_129 = arith.constant 0 : index
    %c0_130 = arith.constant 0 : index
    %211 = vector.load %arg14[%c0_129, %c0_130] : memref<72x78xbf16, #tpu.memory_space<vmem>>, vector<72x78xbf16>
    %cst_131 = arith.constant dense<0.000000e+00> : vector<8x78xf32>
    %212 = tpu.matmul %210, %211, %cst_131 {dimension_numbers = #tpu.dot_dimension_numbers<[1], [0], [0], [1], [0, 0, 1, 1], [], []>} : vector<8x72xbf16>, vector<72x78xbf16>, vector<8x78xf32> -> vector<8x78xf32>
    %213 = vector.extract_strided_slice %212 {offsets = [0, 0], sizes = [8, 8], strides = [1, 1]} : vector<8x78xf32> to vector<8x8xf32>
    %214 = vector.extract_strided_slice %142 {offsets = [0, 0], sizes = [8, 8], strides = [1, 1]} : vector<8x71xf32> to vector<8x8xf32>
    %215 = arith.addf %213, %214 : vector<8x8xf32>
    %c0_132 = arith.constant 0 : index
    %c0_133 = arith.constant 0 : index
    %c0_134 = arith.constant 0 : index
    %216 = vector.load %arg11[%c0_132, %c0_133, %c0_134] : memref<1x8x64xf32, #tpu.memory_space<vmem>>, vector<1x8x8xf32>
    %217 = vector.shape_cast %216 : vector<1x8x8xf32> to vector<8x8xf32>
    %218 = vector.shape_cast %215 : vector<8x8xf32> to vector<1x8x8xf32>
    tpu.vector_store %arg11[%c0_132, %c0_133, %c0_134], %218 {strides = array<i32>} : memref<1x8x64xf32, #tpu.memory_space<vmem>>, vector<1x8x8xf32>,
    %219 = vector.extract_strided_slice %212 {offsets = [0, 10], sizes = [8, 8], strides = [1, 1]} : vector<8x78xf32> to vector<8x8xf32>
    %220 = vector.extract_strided_slice %142 {offsets = [0, 9], sizes = [8, 8], strides = [1, 1]} : vector<8x71xf32> to vector<8x8xf32>
    %221 = arith.addf %219, %220 : vector<8x8xf32>
    %c0_135 = arith.constant 0 : index
    %c0_136 = arith.constant 0 : index
    %c8_137 = arith.constant 8 : index
    %222 = vector.load %arg11[%c0_135, %c0_136, %c8_137] : memref<1x8x64xf32, #tpu.memory_space<vmem>>, vector<1x8x8xf32>
    %223 = vector.shape_cast %222 : vector<1x8x8xf32> to vector<8x8xf32>
    %224 = vector.shape_cast %221 : vector<8x8xf32> to vector<1x8x8xf32>
    tpu.vector_store %arg11[%c0_135, %c0_136, %c8_137], %224 {strides = array<i32>} : memref<1x8x64xf32, #tpu.memory_space<vmem>>, vector<1x8x8xf32>,
    %225 = vector.extract_strided_slice %212 {offsets = [0, 20], sizes = [8, 8], strides = [1, 1]} : vector<8x78xf32> to vector<8x8xf32>
    %226 = vector.extract_strided_slice %142 {offsets = [0, 18], sizes = [8, 8], strides = [1, 1]} : vector<8x71xf32> to vector<8x8xf32>
    %227 = arith.addf %225, %226 : vector<8x8xf32>
    %c0_138 = arith.constant 0 : index
    %c0_139 = arith.constant 0 : index
    %c16_140 = arith.constant 16 : index
    %228 = vector.load %arg11[%c0_138, %c0_139, %c16_140] : memref<1x8x64xf32, #tpu.memory_space<vmem>>, vector<1x8x8xf32>
    %229 = vector.shape_cast %228 : vector<1x8x8xf32> to vector<8x8xf32>
    %230 = vector.shape_cast %227 : vector<8x8xf32> to vector<1x8x8xf32>
    tpu.vector_store %arg11[%c0_138, %c0_139, %c16_140], %230 {strides = array<i32>} : memref<1x8x64xf32, #tpu.memory_space<vmem>>, vector<1x8x8xf32>,
    %231 = vector.extract_strided_slice %212 {offsets = [0, 30], sizes = [8, 8], strides = [1, 1]} : vector<8x78xf32> to vector<8x8xf32>
    %232 = vector.extract_strided_slice %142 {offsets = [0, 27], sizes = [8, 8], strides = [1, 1]} : vector<8x71xf32> to vector<8x8xf32>
    %233 = arith.addf %231, %232 : vector<8x8xf32>
    %c0_141 = arith.constant 0 : index
    %c0_142 = arith.constant 0 : index
    %c24_143 = arith.constant 24 : index
    %234 = vector.load %arg11[%c0_141, %c0_142, %c24_143] : memref<1x8x64xf32, #tpu.memory_space<vmem>>, vector<1x8x8xf32>
    %235 = vector.shape_cast %234 : vector<1x8x8xf32> to vector<8x8xf32>
    %236 = vector.shape_cast %233 : vector<8x8xf32> to vector<1x8x8xf32>
    tpu.vector_store %arg11[%c0_141, %c0_142, %c24_143], %236 {strides = array<i32>} : memref<1x8x64xf32, #tpu.memory_space<vmem>>, vector<1x8x8xf32>,
    %237 = vector.extract_strided_slice %212 {offsets = [0, 40], sizes = [8, 8], strides = [1, 1]} : vector<8x78xf32> to vector<8x8xf32>
    %238 = vector.extract_strided_slice %142 {offsets = [0, 36], sizes = [8, 8], strides = [1, 1]} : vector<8x71xf32> to vector<8x8xf32>
    %239 = arith.addf %237, %238 : vector<8x8xf32>
    %c0_144 = arith.constant 0 : index
    %c0_145 = arith.constant 0 : index
    %c32_146 = arith.constant 32 : index
    %240 = vector.load %arg11[%c0_144, %c0_145, %c32_146] : memref<1x8x64xf32, #tpu.memory_space<vmem>>, vector<1x8x8xf32>
    %241 = vector.shape_cast %240 : vector<1x8x8xf32> to vector<8x8xf32>
    %242 = vector.shape_cast %239 : vector<8x8xf32> to vector<1x8x8xf32>
    tpu.vector_store %arg11[%c0_144, %c0_145, %c32_146], %242 {strides = array<i32>} : memref<1x8x64xf32, #tpu.memory_space<vmem>>, vector<1x8x8xf32>,
    %243 = vector.extract_strided_slice %212 {offsets = [0, 50], sizes = [8, 8], strides = [1, 1]} : vector<8x78xf32> to vector<8x8xf32>
    %244 = vector.extract_strided_slice %142 {offsets = [0, 45], sizes = [8, 8], strides = [1, 1]} : vector<8x71xf32> to vector<8x8xf32>
    %245 = arith.addf %243, %244 : vector<8x8xf32>
    %c0_147 = arith.constant 0 : index
    %c0_148 = arith.constant 0 : index
    %c40_149 = arith.constant 40 : index
    %246 = vector.load %arg11[%c0_147, %c0_148, %c40_149] : memref<1x8x64xf32, #tpu.memory_space<vmem>>, vector<1x8x8xf32>
    %247 = vector.shape_cast %246 : vector<1x8x8xf32> to vector<8x8xf32>
    %248 = vector.shape_cast %245 : vector<8x8xf32> to vector<1x8x8xf32>
    tpu.vector_store %arg11[%c0_147, %c0_148, %c40_149], %248 {strides = array<i32>} : memref<1x8x64xf32, #tpu.memory_space<vmem>>, vector<1x8x8xf32>,
    %249 = vector.extract_strided_slice %212 {offsets = [0, 60], sizes = [8, 8], strides = [1, 1]} : vector<8x78xf32> to vector<8x8xf32>
    %250 = vector.extract_strided_slice %142 {offsets = [0, 54], sizes = [8, 8], strides = [1, 1]} : vector<8x71xf32> to vector<8x8xf32>
    %251 = arith.addf %249, %250 : vector<8x8xf32>
    %c0_150 = arith.constant 0 : index
    %c0_151 = arith.constant 0 : index
    %c48_152 = arith.constant 48 : index
    %252 = vector.load %arg11[%c0_150, %c0_151, %c48_152] : memref<1x8x64xf32, #tpu.memory_space<vmem>>, vector<1x8x8xf32>
    %253 = vector.shape_cast %252 : vector<1x8x8xf32> to vector<8x8xf32>
    %254 = vector.shape_cast %251 : vector<8x8xf32> to vector<1x8x8xf32>
    tpu.vector_store %arg11[%c0_150, %c0_151, %c48_152], %254 {strides = array<i32>} : memref<1x8x64xf32, #tpu.memory_space<vmem>>, vector<1x8x8xf32>,
    %255 = vector.extract_strided_slice %212 {offsets = [0, 70], sizes = [8, 8], strides = [1, 1]} : vector<8x78xf32> to vector<8x8xf32>
    %256 = vector.extract_strided_slice %142 {offsets = [0, 63], sizes = [8, 8], strides = [1, 1]} : vector<8x71xf32> to vector<8x8xf32>
    %257 = arith.addf %255, %256 : vector<8x8xf32>
    %c0_153 = arith.constant 0 : index
    %c0_154 = arith.constant 0 : index
    %c56_155 = arith.constant 56 : index
    %258 = vector.load %arg11[%c0_153, %c0_154, %c56_155] : memref<1x8x64xf32, #tpu.memory_space<vmem>>, vector<1x8x8xf32>
    %259 = vector.shape_cast %258 : vector<1x8x8xf32> to vector<8x8xf32>
    %260 = vector.shape_cast %257 : vector<8x8xf32> to vector<1x8x8xf32>
    tpu.vector_store %arg11[%c0_153, %c0_154, %c56_155], %260 {strides = array<i32>} : memref<1x8x64xf32, #tpu.memory_space<vmem>>, vector<1x8x8xf32>,
    return
  }
  func.func @transform_0(%arg0: i32) -> (i32, i32, i32, i32) {
    %c0_i32 = arith.constant 0 : i32
    %c0_i32_0 = arith.constant 0 : i32
    %c0_i32_1 = arith.constant 0 : i32
    %c0_i32_2 = arith.constant 0 : i32
    return %arg0, %c0_i32, %c0_i32_0, %c0_i32_1 : i32, i32, i32, i32
  }
  func.func @transform_1(%arg0: i32) -> (i32, i32, i32) {
    %c0_i32 = arith.constant 0 : i32
    %c0_i32_0 = arith.constant 0 : i32
    %c0_i32_1 = arith.constant 0 : i32
    %c0_i32_2 = arith.constant 0 : i32
    return %c0_i32, %c0_i32_0, %c0_i32_1 : i32, i32, i32
  }
  func.func @transform_2(%arg0: i32) -> (i32, i32) {
    %c0_i32 = arith.constant 0 : i32
    %c0_i32_0 = arith.constant 0 : i32
    %c0_i32_1 = arith.constant 0 : i32
    return %c0_i32, %c0_i32_0 : i32, i32
  }
  func.func @transform_3(%arg0: i32) -> (i32, i32) {
    %c0_i32 = arith.constant 0 : i32
    %c0_i32_0 = arith.constant 0 : i32
    %c0_i32_1 = arith.constant 0 : i32
    return %c0_i32, %c0_i32_0 : i32, i32
  }
  func.func @transform_4(%arg0: i32) -> (i32, i32) {
    %c0_i32 = arith.constant 0 : i32
    %c0_i32_0 = arith.constant 0 : i32
    %c0_i32_1 = arith.constant 0 : i32
    return %c0_i32, %c0_i32_0 : i32, i32
  }
  func.func @transform_5(%arg0: i32) -> (i32, i32) {
    %c0_i32 = arith.constant 0 : i32
    %c0_i32_0 = arith.constant 0 : i32
    %c0_i32_1 = arith.constant 0 : i32
    return %c0_i32, %c0_i32_0 : i32, i32
  }
  func.func @transform_6(%arg0: i32) -> (i32, i32) {
    %c0_i32 = arith.constant 0 : i32
    %c0_i32_0 = arith.constant 0 : i32
    %c0_i32_1 = arith.constant 0 : i32
    return %c0_i32, %c0_i32_0 : i32, i32
  }
  func.func @transform_7(%arg0: i32) -> (i32, i32) {
    %c0_i32 = arith.constant 0 : i32
    %c0_i32_0 = arith.constant 0 : i32
    %c0_i32_1 = arith.constant 0 : i32
    return %c0_i32, %c0_i32_0 : i32, i32
  }
  func.func @transform_8(%arg0: i32) -> (i32, i32) {
    %c0_i32 = arith.constant 0 : i32
    %c0_i32_0 = arith.constant 0 : i32
    %c0_i32_1 = arith.constant 0 : i32
    return %c0_i32, %c0_i32_0 : i32, i32
  }
  func.func @transform_9(%arg0: i32) -> (i32, i32) {
    %c0_i32 = arith.constant 0 : i32
    %c0_i32_0 = arith.constant 0 : i32
    %c0_i32_1 = arith.constant 0 : i32
    return %c0_i32, %c0_i32_0 : i32, i32
  }
  func.func @transform_10(%arg0: i32) -> (i32, i32, i32) {
    %c0_i32 = arith.constant 0 : i32
    %c0_i32_0 = arith.constant 0 : i32
    %c0_i32_1 = arith.constant 0 : i32
    return %arg0, %c0_i32, %c0_i32_0 : i32, i32, i32
  }
}

</mosaic_0001>

<bundles_post_ra>
// kernel: block_forward.1
= control target key start
LH: loop header
LB: loop body
LE: loop exit
PB: predicated region body
PF: predicated region fallthrough
CT: control target
= control target key end

     0   :  { %s1091_s13 = smov 0   ;;  %s1233_s0 = inlined_call_operand.vmem [shape: f32[2,4,4,81], index: 0, kind: input, shape index: {}]   ;;  %s1234_s1 = inlined_call_operand.vmem [shape: f32[4,1,81], index: 1, kind: input, shape index: {}]   ;;  %s1235_s2 = inlined_call_operand.vmem [shape: f32[4,1], index: 2, kind: input, shape index: {}]   ;;  %s1236_s3 = inlined_call_operand.vmem [shape: f32[4,1], index: 3, kind: input, shape index: {}]   ;;  %s1237_s4 = inlined_call_operand.vmem [shape: bf16[8,36], index: 4, kind: input, shape index: {}]   ;;  %s1238_s5 = inlined_call_operand.vmem [shape: f32[1,71], index: 5, kind: input, shape index: {}]   ;;  %s1239_s6 = inlined_call_operand.vmem [shape: f32[8,1], index: 6, kind: input, shape index: {}]   ;;  %s1240_s7 = inlined_call_operand.vmem [shape: f32[8,1], index: 7, kind: input, shape index: {}]   ;;  %s1241_s8 = inlined_call_operand.vmem [shape: bf16[8,72], index: 8, kind: input, shape index: {}]   ;;  %s1242_s9 = inlined_call_operand.vmem [shape: bf16[8,4], index: 9, kind: input, shape index: {}]   ;;  %s1243_s10 = inlined_call_operand.vmem [shape: f32[2,8,64], index: 10, kind: output, shape index: {}]  }
   0x1 LB: > { %s901_s14 = sadd.s32 4294967295, %s1005_s13   ;;  %p905_p0 = scmp.ge.s32.totalorder %s1005_s13, 1  ;;  %s1005_s13 = sphi %s1091_s13, %s20_s13  }
   0x2   : > { %p312_p1 = scmp.lt.s32.totalorder %s1005_s13, 3 }
   0x4   : > { %p313_p2 = pnand %p905_p0, %p312_p1 }
   0x5   : > { %p349_p3 = scmp.lt.s32.totalorder (!%p313_p2), %s901_s14, 1  ;;  %s1008_s11 = smov (!%p313_p2), 119  }
   0x6   : > { %316 = sbr.rel (%p313_p2) target bundleno = 1630 (0x65e), region = 60  ;;  %s1009_s12 = smov (!%p313_p2), 118  }
   0x7   : > { %s1011_s24 = smov (!%p313_p2), 16   ;;  %s1012_s25 = smov (!%p313_p2), 14  }
   0x8   : > { %s1013_s26 = smov (!%p313_p2), 11   ;;  %s1014_s27 = smov (!%p313_p2), 12  }
   0x9   : > { %s1015_s28 = smov (!%p313_p2), 13   ;;  %s1016_s29 = smov (!%p313_p2), 15  }
   0xa   : > { %s1017_s30 = smov (!%p313_p2), 17   ;;  %s1020_s19 = smov (!%p313_p2), 107  }
   0xb   : > { %s1245_s14 = smov (!%p349_p3, %s901_s14), 1  ;;  %vm366_vm0 = vcmask 658432   ;;  %v1124_v15 = vld [vmem:[%s1234_s1 + $0x3] ss:$0 sm:$0xff]  ;;  %v1129_v17 = vld [vmem:[%s1234_s1 + $0x2] ss:$0 sm:$0xff] }
   0xc   : > { %s944_s15 = sshll.u32 %s1245_s14, 4  ;;  %v1134_v18 = vld [vmem:[%s1234_s1] ss:$0 sm:$0xff]  ;;  %v993_v26 = vld [vmem:[%s1234_s1 + $0x1] ss:$0 sm:$0xff]  ;;  %v1007_v36 = vmov 0  }
   0xd   : > { %s353_s18 = scalar_lea.vmem %s1233_s0, %s944_s15  ;;  %988 = vset.pattern.permute.xlu2 %v1007_v36  ;;  %989 = vset.pattern.permute.xlu0 %v1007_v36  ;;  %v431_v51 = vld [vmem:[%s1235_s2] sm:$0xf]  ;;  %vm478_vm4 = vcmask 574464   ;;  %vm483_vm5 = vcmask 576514   ;;  %s1010_s15 = smov 127   ;;  %vm536_vm6 = vcmask 1041408  }
   0xe   : > { %v1105_v0 = vld [vmem:[%s353_s18] sm:$0xf]  ;;  %v1107_v1 = vld [vmem:[%s353_s18 + $0x8] sm:$0xf]  ;;  %v1113_v4 = vld [vmem:[%s353_s18 + $0x4] sm:$0xf] }
   0xf   : > { %v367_v2 = vsel %vm366_vm0, %v1105_v0, 0.0  ;;  %v375_v3 = vsel %vm366_vm0, %v1107_v1, 0.0  ;;  %v1115_v5 = vld [vmem:[%s353_s18 + $0xc] sm:$0xf]  ;;  %v371_v6 = vsel %vm366_vm0, %v1113_v4, 0.0  ;;  %vm532_vm7 = vcmask 293888  }
  0x10   : > { %368 = vadd.xlane.f32.xlu0 %v367_v2  ;;  %376 = vadd.xlane.f32.xlu1 %v375_v3  ;;  %v379_v7 = vsel %vm366_vm0, %v1115_v5, 0.0  ;;  %v445_v55 = vld [vmem:[%s1236_s3] sm:$0xf]  ;;  %vm580_vm8 = vcmask 580608   ;;  %vm621_vm12 = vcmask 814080   ;;  %vm628_vm13 = vcmask 150616  }
  0x11   : > { %622 = vst.msk [vmem:[#allocation3] sm:$0xf] %vm621_vm12, %v1007_v36  ;;  %vm633_vm14 = vcmask 232616   ;;  %vm638_vm15 = vcmask 314616   ;;  %s1019_s18 = smov 106   ;;  %s1021_s20 = smov 108  }
  0x12   : > { %s1022_s21 = smov 117   ;;  %s1023_s22 = smov 126   ;;  %vm806_vm12 = vcmask 261312  }
  0x13   : > { %s1024_s23 = smov 116   ;;  %s908_s16 = sshll.u32 %s1245_s14, 3 }
  0x14   : > { %s1034_s14 = smov 120  }
  0x18   : > { %372 = vadd.xlane.f32.xlu0 %v371_v6  ;;  %380 = vadd.xlane.f32.xlu1 %v379_v7 }
  0x83   : > { %v369_v8 = vpop.xlane.xlu0 %368  ;;  %v377_v9 = vpop.xlane.xlu1 %376 }
  0x8b   : > { %v373_v10 = vpop.xlane.xlu0 %372  ;;  %v381_v12 = vpop.xlane.xlu1 %380 }
  0x8c   : > { %v374_v11 = vadd.f32 %v373_v10, %v369_v8 }
  0x8e   : > { %v378_v13 = vadd.f32 %v377_v9, %v374_v11 }
  0x90   : > { %v382_v14 = vadd.f32 %v381_v12, %v378_v13 }
  0x92   : > { %v383_v16 = vmul.f32 0.00390625, %v382_v14 }
  0x94   : > { %v419_v19 = vsub.f32 %v1115_v5, %v383_v16  ;;  %v407_v20 = vsub.f32 %v1107_v1, %v383_v16  ;;  %v384_v21 = vsub.f32 %v1105_v0, %v383_v16  ;;  %v395_v25 = vsub.f32 %v1113_v4, %v383_v16 }
  0x96   : > { %v425_v22 = vmul.f32 %v1124_v15, %v419_v19  ;;  %v413_v23 = vmul.f32 %v1129_v17, %v407_v20  ;;  %v389_v24 = vmul.f32 %v1134_v18, %v384_v21  ;;  %v401_v33 = vmul.f32 %v993_v26, %v395_v25 }
  0x98   : > { %v426_v27 = vmul.f32 %v425_v22, %v425_v22  ;;  %v414_v28 = vmul.f32 %v413_v23, %v413_v23  ;;  %v390_v29 = vmul.f32 %v389_v24, %v389_v24  ;;  %v402_v34 = vmul.f32 %v401_v33, %v401_v33 }
  0x9a   : > { %v427_v30 = vsel %vm366_vm0, %v426_v27, 0.0  ;;  %v415_v31 = vsel %vm366_vm0, %v414_v28, 0.0  ;;  %v391_v32 = vsel %vm366_vm0, %v390_v29, 0.0  ;;  %v403_v35 = vsel %vm366_vm0, %v402_v34, 0.0 }
  0x9b   : > { %428 = vadd.xlane.f32.xlu1 %v427_v30  ;;  %416 = vadd.xlane.f32.xlu0 %v415_v31  ;;  %v511_v30 = vld [vmem:[%s1237_s4] sm:$0xf]  ;;  %vm643_vm0 = vcmask 396616  }
  0x9c   : > { %392 = vadd.xlane.f32.xlu2 %v391_v32  ;;  %v994_v31 = vld [vmem:[%s1238_s5] ss:$0 sm:$0xff] }
  0xa4   : > { %404 = vadd.xlane.f32.xlu2 %v403_v35 }
 0x10e   : > { %v417_v40 = vpop.xlane.xlu0 %416  ;;  %v429_v42 = vpop.xlane.xlu1 %428 }
 0x10f   : > { %v393_v37 = vpop.xlane.xlu2 %392 }
 0x117   : > { %v405_v38 = vpop.xlane.xlu2 %404 }
 0x118   : > { %v406_v39 = vadd.f32 %v405_v38, %v393_v37 }
 0x11a   : > { %v418_v41 = vadd.f32 %v417_v40, %v406_v39 }
 0x11c   : > { %v430_v43 = vadd.f32 %v429_v42, %v418_v41 }
 0x11e   : > { %v432_v44 = vmul.f32 0.00390625, %v430_v43 }
 0x120   : > { %v433_v45 = vadd.f32 1e-05, %v432_v44 }
 0x122   : > { %995 = vrsqrt.f32 %v433_v45  ;;  %vm440_vm2 = vweird.f32 %v433_v45 }
 0x128   : > { %v996_v46 = vpop.eup %995 }
 0x129   : > { %v435_v47 = vmul.f32 %v996_v46, %v433_v45  ;;  %vm441_vm1 = vweird.f32 %v996_v46 }
 0x12a   : > { %vm442_vm3 = vmor %vm440_vm2, %vm441_vm1  ;;  %vm648_vm1 = vcmask 478616   ;;  %vm653_vm2 = vcmask 560616  }
 0x12b   : > { %v436_v48 = vmul.f32 %v996_v46, %v435_v47 }
 0x12d   : > { %v437_v49 = vmul.f32 0.5, %v436_v48 }
 0x12f   : > { %v438_v50 = vsub.f32 1.5, %v437_v49 }
 0x131   : > { %v439_v52 = vmul.f32 %v996_v46, %v438_v50 }
 0x133   : > { %v443_v53 = vsel %vm442_vm3, %v996_v46, %v439_v52  ;;  %vm658_vm3 = vcmask 642616  }
 0x134   : > { %v444_v54 = vmul.f32 %v443_v53, %v431_v51  ;;  %v592_v51 = vld [vmem:[%s1239_s6] sm:$0xff] }
 0x136   : > { %450 = vperm.xlu2 %988, %v444_v54   ;;  %v446_v56 = vmul.f32 %v444_v54, %v383_v16 }
 0x138   : > { %v447_v57 = vsub.f32 %v445_v55, %v446_v56  ;;  %v605_v56 = vld [vmem:[%s1240_s7] sm:$0xff] }
 0x13a   : > { %456 = vperm.xlu0 %989, %v447_v57  }
 0x190   : > { %v451_v58 = vpop.permute.xlu2 %450 }
 0x191   : > { %v453_v59 = vmul.f32 %v451_v58, %v1105_v0  ;;  %v463_v60 = vmul.f32 %v1113_v4, %v451_v58  ;;  %v468_v61 = vmul.f32 %v1107_v1, %v451_v58  ;;  %v473_v62 = vmul.f32 %v1115_v5, %v451_v58 }
 0x1ac   : > { %v457_v63 = vpop.permute.xlu0 %456 }
 0x1ad   : > { %v459_v2 = vadd.f32 %v457_v63, %v453_v59  ;;  %v464_v3 = vadd.f32 %v463_v60, %v457_v63  ;;  %v469_v6 = vadd.f32 %v468_v61, %v457_v63  ;;  %v474_v7 = vadd.f32 %v473_v62, %v457_v63 }
 0x1af   : > { %v460_v8 = vmax.f32 %v459_v2, 0.0  ;;  %v465_v9 = vmax.f32 %v464_v3, 0.0  ;;  %v470_v10 = vmax.f32 %v469_v6, 0.0  ;;  %v475_v11 = vmax.f32 %v474_v7, 0.0 }
 0x1b1   : > { %v476_v12 = vmul.f32 %v1124_v15, %v475_v11  ;;  %v461_v13 = vmul.f32 %v1134_v18, %v460_v8  ;;  %v471_v0 = vmul.f32 %v1129_v17, %v470_v10  ;;  %v466_v4 = vmul.f32 %v993_v26, %v465_v9 }
 0x1b2   : > { %v553_v10 = vpack.c.bf16 %v1115_v5, %v1115_v5 }
 0x1b3   : > { %v477_v1 = vpack.c.bf16 %v476_v12, %v476_v12  ;;  %v462_v14 = vpack.c.bf16 %v461_v13, %v461_v13  ;;  %v472_v16 = vpack.c.bf16 %v471_v0, %v471_v0  ;;  %v467_v19 = vpack.c.bf16 %v466_v4, %v466_v4  ;;  %v554_v12 = vld [vmem:[%s1242_s9] sm:$0xf] }
 0x1b4   : > { %v560_v11 = vsel %vm536_vm6, %v553_v10, 0 }
 0x1b5   : > { %499 = vrot.lane.b32.xlu2 %v462_v14, %s1008_s11  ;;  %507 = vrot.lane.b32.xlu1 %v462_v14, %s1009_s12  ;;  %v491_v20 = vrot.slane %v472_v16, 6  ;;  %v481_v21 = vrot.slane %v467_v19, 6  ;;  %479 = vst.msk [vmem:[#allocation2] sm:$0x3] %vm478_vm4, %v462_v14 }
 0x1b6   : > { %494 = vst.msk [vmem:[#allocation2 + $0x8] sm:$0x3] %vm478_vm4, %v477_v1  ;;  %569 = vmatpush.bf16.msra.mxu1 %v560_v11 }
 0x1b7   : > { %484 = vst.msk [vmem:[#allocation2] sm:$0xc] %vm483_vm5, %v481_v21 }
 0x1b8   : > { %493 = vst.msk [vmem:[#allocation2 + $0x4] sm:$0xc] %vm483_vm5, %v491_v20 }
 0x1bd   : > { %495 = vrot.lane.b32.xlu2 %v491_v20, %s1010_s15  ;;  %503 = vrot.lane.b32.xlu1 %v481_v21, %s1008_s11  ;;  %s1018_s11 = smov 18  }
 0x1c5   : > { %486 = vrot.lane.b32.xlu2 %v462_v14, %s1010_s15 }
 0x20f   : > { %v500_v15 = vpop.permute.xlu2 %499 }
 0x210   : > { %502 = vst.msk [vmem:[#allocation2 + $0xc] sm:$0x3] %vm478_vm4, %v500_v15 }
 0x217   : > { %v496_v17 = vpop.permute.xlu2 %495 }
 0x218   : > { %498 = vst.msk [vmem:[#allocation2 + $0x8] sm:$0xc] %vm483_vm5, %v496_v17 }
 0x21f   : > { %v487_v18 = vpop.permute.xlu2 %486 }
 0x220   : > { %489 = vst.msk [vmem:[#allocation2 + $0x4] sm:$0x3] %vm478_vm4, %v487_v18 }
 0x227   : > { %v508_v22 = vpop.permute.xlu1 %507  ;;  %v945_v29 = vld [vmem:[#allocation2] sm:$0xff] }
 0x228   : > { %510 = vst.msk [vmem:[#allocation2 + $0x10] sm:$0x3] %vm478_vm4, %v508_v22  ;;  %vm555_vm4 = vcmask 31744  }
 0x229   : > { %924 = vmatmul.msk.bf16.vlgmr.msra.gmra.mxu1 %vm555_vm4, %v554_v12 }
 0x22f   : > { %v504_v23 = vpop.permute.xlu1 %503  ;;  %v516_v24 = vld [vmem:[#allocation2 + $0x10] sm:$0x3] }
 0x230   : > { %506 = vst.msk [vmem:[#allocation2 + $0xc] sm:$0xc] %vm483_vm5, %v504_v23  ;;  %v526_v25 = vunpack.c.l.b16 %v516_v24  ;;  %vm663_vm5 = vcmask 724616  }
 0x232   : > { %v529_v26 = vpack.c.b16 %v526_v25, %v526_v25 }
 0x234   : > { %v538_v27 = vsel %vm536_vm6, %v529_v26, 0  ;;  %vm757_vm6 = vcmask 1043456  }
 0x235   : > { %545 = vmatpush.bf16.msra.mxu0 %v538_v27 }
 0x237   : > { %v946_v28 = vld [vmem:[#allocation2 + $0x8] sm:$0xff] }
 0x239   : > { %546 = vmatpush.bf16.msra.mxu0 %v946_v28 }
 0x23d   : > { %547 = vmatpush.bf16.msra.mxu0 %v945_v29 }
 0x240   : > { %923 = vmatmul.msk.bf16.vlgmr.msra.gmra.mxu0 %vm532_vm7, %v511_v30  ;;  %vm666_vm7 = vcmask 633856  }
 0x2a6   : > { %v571_v23 = vpop.f32.mrf.mxu1 }
 0x2ae   : > { %v573_v28 = vpop.f32.mrf.mxu1 }
 0x2bd   : > { %v549_v32 = vpop.f32.mrf.mxu0 }
 0x2be   : > { %v579_v33 = vmul.f32 %v994_v31, %v549_v32 }
 0x2c0   : > { %v581_v34 = vsel %vm580_vm8, %v579_v33, 0.0 }
 0x2c1   : > { %582 = vadd.xlane.f32.xlu1 %v581_v34 }
 0x2c5   : > { %v551_v35 = vpop.f32.mrf.mxu0 }
 0x334   : > { %v583_v37 = vpop.xlane.xlu1 %582 }
 0x335   : > { %v584_v38 = vmul.f32 0.015625, %v583_v37 }
 0x337   : > { %v585_v39 = vsub.f32 %v549_v32, %v584_v38 }
 0x339   : > { %v586_v40 = vmul.f32 %v994_v31, %v585_v39 }
 0x33b   : > { %v587_v41 = vmul.f32 %v586_v40, %v586_v40 }
 0x33d   : > { %v588_v42 = vsel %vm580_vm8, %v587_v41, 0.0  ;;  %vm753_vm8 = vcmask 588800  }
 0x33e   : > { %589 = vadd.xlane.f32.xlu0 %v588_v42 }
 0x3b1   : > { %v590_v43 = vpop.xlane.xlu0 %589 }
 0x3b2   : > { %v591_v44 = vmul.f32 0.015625, %v590_v43 }
 0x3b4   : > { %v593_v45 = vadd.f32 1e-05, %v591_v44 }
 0x3b6   : > { %997 = vrsqrt.f32 %v593_v45  ;;  %vm600_vm10 = vweird.f32 %v593_v45 }
 0x3bc   : > { %v998_v46 = vpop.eup %997 }
 0x3bd   : > { %v595_v47 = vmul.f32 %v998_v46, %v593_v45  ;;  %vm601_vm9 = vweird.f32 %v998_v46 }
 0x3be   : > { %vm602_vm11 = vmor %vm600_vm10, %vm601_vm9  ;;  %vm775_vm9 = vcmask 64512   ;;  %vm786_vm10 = vcmask 130112  }
 0x3bf   : > { %v596_v48 = vmul.f32 %v998_v46, %v595_v47 }
 0x3c1   : > { %v597_v49 = vmul.f32 0.5, %v596_v48 }
 0x3c3   : > { %v598_v50 = vsub.f32 1.5, %v597_v49 }
 0x3c5   : > { %v599_v52 = vmul.f32 %v998_v46, %v598_v50 }
 0x3c7   : > { %v603_v53 = vsel %vm602_vm11, %v998_v46, %v599_v52  ;;  %vm796_vm11 = vcmask 195712  }
 0x3c8   : > { %v604_v54 = vmul.f32 %v603_v53, %v592_v51 }
 0x3ca   : > { %610 = vperm.xlu2 %988, %v604_v54   ;;  %v606_v55 = vmul.f32 %v604_v54, %v584_v38  ;;  %v716_v38 = vld [vmem:[%s1241_s8] sm:$0xf] }
 0x3cc   : > { %v607_v57 = vsub.f32 %v605_v56, %v606_v55 }
 0x3d2   : > { %616 = vperm.xlu2 %988, %v607_v57  }
 0x424   : > { %v611_v58 = vpop.permute.xlu2 %610 }
 0x425   : > { %v613_v59 = vmul.f32 %v611_v58, %v549_v32 }
 0x42c   : > { %v617_v60 = vpop.permute.xlu2 %616 }
 0x42d   : > { %v619_v61 = vadd.f32 %v617_v60, %v613_v59 }
 0x42f   : > { %v620_v62 = vmax.f32 %v619_v61, 0.0 }
 0x431   : > { %v623_v63 = vpack.c.bf16 %v620_v62, %v620_v62 }
 0x433   : > { %650 = vrot.lane.b32.xlu0 %v623_v63, %s1011_s24  ;;  %640 = vrot.lane.b32.xlu1 %v623_v63, %s1012_s25  ;;  %s1025_s24 = smov 1   ;;  %s1026_s25 = smov 2  }
 0x434   : > { %625 = vrot.lane.b32.xlu2 %v623_v63, %s1013_s26  ;;  %s1027_s26 = smov 3  }
 0x43c   : > { %630 = vrot.lane.b32.xlu2 %v623_v63, %s1014_s27  ;;  %s1029_s27 = smov 5  }
 0x444   : > { %635 = vrot.lane.b32.xlu2 %v623_v63, %s1015_s28  ;;  %s1030_s28 = smov 6  }
 0x44c   : > { %645 = vrot.lane.b32.xlu2 %v623_v63, %s1016_s29  ;;  %s1031_s29 = smov 7  }
 0x454   : > { %655 = vrot.lane.b32.xlu2 %v623_v63, %s1017_s30 }
 0x45c   : > { %660 = vrot.lane.b32.xlu2 %v623_v63, %s1018_s11 }
 0x48e   : > { %v626_v2 = vpop.permute.xlu2 %625 }
 0x48f   : > { %629 = vst.msk [vmem:[#allocation3] sm:$0xf] %vm628_vm13, %v626_v2  ;;  %vm816_vm13 = vcmask 326912  }
 0x496   : > { %v631_v3 = vpop.permute.xlu2 %630 }
 0x497   : > { %634 = vst.msk [vmem:[#allocation3] sm:$0xf] %vm633_vm14, %v631_v3  ;;  %vm826_vm14 = vcmask 392512  }
 0x49e   : > { %v636_v6 = vpop.permute.xlu2 %635 }
 0x49f   : > { %639 = vst.msk [vmem:[#allocation3] sm:$0xf] %vm638_vm15, %v636_v6  ;;  %vm836_vm15 = vcmask 458112  }
 0x4a5   : > { %v641_v36 = vpop.permute.xlu1 %640  ;;  %v651_v8 = vpop.permute.xlu0 %650 }
 0x4a6   : > { %644 = vst.msk [vmem:[#allocation3] sm:$0xf] %vm643_vm0, %v641_v36  ;;  %v646_v7 = vpop.permute.xlu2 %645  ;;  %vm846_vm0 = vcmask 523712  }
 0x4a7   : > { %649 = vst.msk [vmem:[#allocation3] sm:$0xf] %vm648_vm1, %v646_v7 }
 0x4a8   : > { %654 = vst.msk [vmem:[#allocation3] sm:$0xf] %vm653_vm2, %v651_v8 }
 0x4ae   : > { %v656_v9 = vpop.permute.xlu2 %655 }
 0x4af   : > { %659 = vst.msk [vmem:[#allocation3] sm:$0xf] %vm658_vm3, %v656_v9 }
 0x4b6   : > { %v661_v13 = vpop.permute.xlu2 %660 }
 0x4b7   : > { %664 = vst.msk [vmem:[#allocation3] sm:$0xf] %vm663_vm5, %v661_v13 }
 0x4be   : > { %v665_v0 = vld [vmem:[#allocation3] sm:$0xf] }
 0x4bf   : > { %v710_v4 = vld [vmem:[#allocation3] sm:$0xf]  ;;  %667 = vst.msk [vmem:[#allocation4] sm:$0xf] %vm666_vm7, %v665_v0 }
 0x4c0   : > { %v704_v1 = vld [vmem:[#allocation3] sm:$0xf]  ;;  %712 = vrot.lane.b32.xlu1 %v710_v4, %s1019_s18 }
 0x4c1   : > { %706 = vrot.lane.b32.xlu2 %v704_v1, %s1020_s19  ;;  %v698_v5 = vld [vmem:[#allocation3] sm:$0xf]  ;;  %s1217_s19 = scalar_lea.vmem %s1243_s10, %s908_s16 }
 0x4c2   : > { %700 = vrot.lane.b32.xlu0 %v698_v5, %s1021_s20  ;;  %v686_v14 = vld [vmem:[#allocation3] sm:$0xf]  ;;  %s1032_s20 = smov 122  }
 0x4c3   : > { %v674_v16 = vld [vmem:[#allocation3] sm:$0xf] }
 0x4c4   : > { %v692_v19 = vld [vmem:[#allocation3] sm:$0xf] }
 0x4c5   : > { %v680_v20 = vld [vmem:[#allocation3] sm:$0xf] }
 0x4c6   : > { %v668_v21 = vld [vmem:[#allocation3] sm:$0xf] }
 0x4c8   : > { %688 = vrot.lane.b32.xlu1 %v686_v14, %s1022_s21  ;;  %s1033_s21 = smov 124  }
 0x4c9   : > { %676 = vrot.lane.b32.xlu2 %v674_v16, %s1023_s22 }
 0x4ca   : > { %694 = vrot.lane.b32.xlu0 %v692_v19, %s1024_s23 }
 0x4d0   : > { %682 = vrot.lane.b32.xlu1 %v680_v20, %s1009_s12 }
 0x4d1   : > { %778 = vrot.lane.b32.xlu2 %v571_v23, %s1025_s24 }
 0x4d2   : > { %670 = vrot.lane.b32.xlu0 %v668_v21, %s1010_s15  ;;  %s1028_s15 = smov 4  }
 0x4d8   : > { %788 = vrot.lane.b32.xlu1 %v571_v23, %s1026_s25 }
 0x4d9   : > { %808 = vrot.lane.b32.xlu2 %v571_v23, %s1028_s15 }
 0x4da   : > { %798 = vrot.lane.b32.xlu0 %v571_v23, %s1027_s26 }
 0x4e0   : > { %818 = vrot.lane.b32.xlu1 %v571_v23, %s1029_s27 }
 0x4e1   : > { %838 = vrot.lane.b32.xlu2 %v571_v23, %s1031_s29 }
 0x4e2   : > { %828 = vrot.lane.b32.xlu0 %v571_v23, %s1030_s28 }
 0x51b   : > { %v707_v15 = vpop.permute.xlu2 %706 }
 0x51c   : > { %709 = vst.msk [vmem:[#allocation4 + $0x1c] sm:$0xf] %vm666_vm7, %v707_v15 }
 0x523   : > { %v677_v17 = vpop.permute.xlu2 %676 }
 0x524   : > { %679 = vst.msk [vmem:[#allocation4 + $0x8] sm:$0xf] %vm666_vm7, %v677_v17 }
 0x52b   : > { %v779_v41 = vpop.permute.xlu2 %778 }
 0x532   : > { %v713_v18 = vpop.permute.xlu1 %712 }
 0x533   : > { %715 = vst.msk [vmem:[#allocation4 + $0x20] sm:$0xf] %vm666_vm7, %v713_v18  ;;  %v809_v49 = vpop.permute.xlu2 %808 }
 0x534   : > { %v701_v22 = vpop.permute.xlu0 %700 }
 0x535   : > { %703 = vst.msk [vmem:[#allocation4 + $0x18] sm:$0xf] %vm666_vm7, %v701_v22 }
 0x53a   : > { %v689_v24 = vpop.permute.xlu1 %688  ;;  %v725_v25 = vld [vmem:[#allocation4 + $0x20] sm:$0xf] }
 0x53b   : > { %691 = vst.msk [vmem:[#allocation4 + $0x10] sm:$0xf] %vm666_vm7, %v689_v24  ;;  %v743_v27 = vunpack.c.l.b16 %v725_v25  ;;  %v839_v54 = vpop.permute.xlu2 %838 }
 0x53c   : > { %v695_v26 = vpop.permute.xlu0 %694  ;;  %v950_v32 = vld [vmem:[#allocation4 + $0x18] sm:$0xff] }
 0x53d   : > { %697 = vst.msk [vmem:[#allocation4 + $0x14] sm:$0xf] %vm666_vm7, %v695_v26  ;;  %v748_v29 = vpack.c.b16 %v743_v27, %v743_v27 }
 0x53f   : > { %v759_v30 = vsel %vm757_vm6, %v748_v29, 0 }
 0x540   : > { %764 = vmatpush.bf16.msra.mxu2 %v759_v30 }
 0x542   : > { %v683_v31 = vpop.permute.xlu1 %682 }
 0x543   : > { %685 = vst.msk [vmem:[#allocation4 + $0xc] sm:$0xf] %vm666_vm7, %v683_v31 }
 0x544   : > { %v671_v33 = vpop.permute.xlu0 %670  ;;  %765 = vmatpush.bf16.msra.mxu2 %v950_v32  ;;  %v949_v34 = vld [vmem:[#allocation4 + $0x10] sm:$0xff] }
 0x545   : > { %673 = vst.msk [vmem:[#allocation4 + $0x4] sm:$0xf] %vm666_vm7, %v671_v33 }
 0x548   : > { %766 = vmatpush.bf16.msra.mxu2 %v949_v34 }
 0x54a   : > { %v948_v35 = vld [vmem:[#allocation4 + $0x8] sm:$0xff]  ;;  %v789_v39 = vpop.permute.xlu1 %788 }
 0x54c   : > { %767 = vmatpush.bf16.msra.mxu2 %v948_v35  ;;  %v947_v37 = vld [vmem:[#allocation4] sm:$0xff]  ;;  %v799_v40 = vpop.permute.xlu0 %798 }
 0x550   : > { %768 = vmatpush.bf16.msra.mxu2 %v947_v37 }
 0x552   : > { %v819_v47 = vpop.permute.xlu1 %818 }
 0x553   : > { %941 = vmatmul.msk.bf16.vlgmr.msra.gmra.mxu2 %vm753_vm8, %v716_v38 }
 0x554   : > { %v829_v48 = vpop.permute.xlu0 %828 }
 0x5d6   : > { %v770_v42 = vpop.f32.mrf.mxu2 }
 0x5d7   : > { %v801_v43 = vadd.f32 %v799_v40, %v770_v42  ;;  %v791_v44 = vadd.f32 %v789_v39, %v770_v42  ;;  %v781_v45 = vadd.f32 %v779_v41, %v770_v42  ;;  %v774_v46 = vadd.f32 %v770_v42, %v571_v23 }
 0x5d8   : > { %v831_v51 = vadd.f32 %v829_v48, %v770_v42  ;;  %v821_v52 = vadd.f32 %v819_v47, %v770_v42  ;;  %v811_v53 = vadd.f32 %v809_v49, %v770_v42  ;;  %v841_v55 = vadd.f32 %v839_v54, %v770_v42 }
 0x5d9   : > { %803 = vrot.lane.b32.xlu2 %v801_v43, %s1032_s20  ;;  %793 = vrot.lane.b32.xlu0 %v791_v44, %s1033_s21  ;;  %776 = vst.msk [vmem:[%s1217_s19] sm:$0xff] %vm775_vm9, %v774_v46 }
 0x5da   : > { %783 = vrot.lane.b32.xlu1 %v781_v45, %s1023_s22  ;;  %s1035_s22 = smov 114  }
 0x5de   : > { %v772_v50 = vpop.f32.mrf.mxu2 }
 0x5e1   : > { %833 = vrot.lane.b32.xlu2 %v831_v51, %s1024_s23  ;;  %823 = vrot.lane.b32.xlu0 %v821_v52, %s1009_s12 }
 0x5e2   : > { %813 = vrot.lane.b32.xlu1 %v811_v53, %s1034_s14 }
 0x5ea   : > { %843 = vrot.lane.b32.xlu1 %v841_v55, %s1035_s22 }
 0x633   : > { %v804_v57 = vpop.permute.xlu2 %803 }
 0x63b   : > { %v834_v61 = vpop.permute.xlu2 %833 }
 0x64b   : > { %v794_v56 = vpop.permute.xlu0 %793 }
 0x64c   : > { %v784_v58 = vpop.permute.xlu1 %783 }
 0x64d   : > { %787 = vst.msk [vmem:[%s1217_s19] sm:$0xff] %vm786_vm10, %v784_v58 }
 0x64e   : > { %797 = vst.msk [vmem:[%s1217_s19] sm:$0xff] %vm796_vm11, %v794_v56 }
 0x64f   : > { %807 = vst.msk [vmem:[%s1217_s19] sm:$0xff] %vm806_vm12, %v804_v57 }
 0x653   : > { %v824_v59 = vpop.permute.xlu0 %823 }
 0x654   : > { %v814_v60 = vpop.permute.xlu1 %813 }
 0x655   : > { %817 = vst.msk [vmem:[%s1217_s19] sm:$0xff] %vm816_vm13, %v814_v60 }
 0x656   : > { %827 = vst.msk [vmem:[%s1217_s19] sm:$0xff] %vm826_vm14, %v824_v59 }
 0x657   : > { %837 = vst.msk [vmem:[%s1217_s19] sm:$0xff] %vm836_vm15, %v834_v61 }
 0x65c   : > { %v844_v62 = vpop.permute.xlu1 %843 }
 0x65d   : > { %847 = vst.msk [vmem:[%s1217_s19] sm:$0xff] %vm846_vm0, %v844_v62 }
 0x65e PF: > { %s20_s13 = sadd.s32 1, %s1005_s13  }
 0x65f   : > { %p17_p4 = scmp.ge.s32.totalorder %s20_s13, 4  }
 0x661   :  { %19 = sbr.rel (!%p17_p4) target bundleno = 1 (0x1), region = 96 }

</bundles_post_ra>
